<compile_context>
chip_gen: v7x
topology: tpu7x:2x2x1
jax: 0.10.0
libtpu: 0.0.40
codegen_flags: <defaults>
</compile_context>

<pallas_src>
import functools

import jax
import jax.numpy as jnp
from jax import lax
from jax.experimental import pallas as pl
from jax.experimental.pallas import tpu as pltpu


def _round_up(x, m):
    return (x + m - 1) // m * m


def _cdiv(a, b):
    return (a + b - 1) // b


def _vmem_limit_bytes():
    """Per-core VMEM budget: ~7/8 of physical (56 MiB v7x, 112 MiB v5e/v6e)."""
    cap = 64 * 1024 * 1024  # conservative default = v7x per-TensorCore VMEM
    try:
        info = pltpu.get_tpu_info()
        cap = int(getattr(info, "vmem_capacity_bytes", cap)) or cap
    except Exception:
        pass
    return (cap * 7) // 8


def lstm_fused_kernel(x_ref, wih_ref, whh_ref, wfc_ref, bias_ref, bfc_ref,
                      out_ref, gx_ref, h_ref, c_ref,
                      *, seq_len, s_chunk, hidden_pad, mxu_dtype):
    """Fused input-projection + LSTM recurrence + fc head.

    Grid = (batch_tile [parallel], time_chunk [arbitrary]).

    x_ref   : (Sc, Bt, D)   f32   streamed input chunk (time-major)
    wih_ref : (D, 4*Hp)     mxu   input->gates weights (transposed, padded)
    whh_ref : (Hp, 4*Hp)    mxu   hidden->gates weights (transposed, padded)
    wfc_ref : (Hp, Op)      f32   fc weight (transposed, padded)
    bias_ref: (1, 4*Hp)     f32   combined b_ih + b_hh (padded)
    bfc_ref : (1, Op)       f32   fc bias (padded)
    out_ref : (Bt, Op)      f32   fc(h_T), written on the last time chunk only
    gx_ref  : (Sc, Bt, 4Hp) f32   VMEM scratch: per-chunk x-projection
    h_ref, c_ref : (Bt, Hp) f32   VMEM scratch carries (persist across chunks)
    """
    Hp = hidden_pad
    T_AX = 1  # inner (serial) time axis of the grid

    @pl.when(pl.program_id(T_AX) == 0)
    def _init():
        h_ref[...] = jnp.zeros_like(h_ref)
        c_ref[...] = jnp.zeros_like(c_ref)

    # ---- fused x -> gates projection: one big MXU matmul per chunk ---------
    # Padded batch rows get bias-only gates (nonzero) but stay row-separable
    # and are discarded by the wrapper.
    sc, bt, d = x_ref.shape
    x2d = x_ref[...].reshape(sc * bt, d).astype(mxu_dtype)
    gx2d = jnp.dot(x2d, wih_ref[...], preferred_element_type=jnp.float32)
    gx_ref[...] = (gx2d + bias_ref[...]).reshape(sc, bt, 4 * Hp)

    whh = whh_ref[...]  # hoisted out of the time loop (loaded once per chunk)

    def run_steps(n_steps):
        def step(t, carry):
            # Only the h-dependent matmul sits on the serial critical path.
            h_mxu = h_ref[...].astype(mxu_dtype)
            gates = gx_ref[t] + jnp.dot(h_mxu, whh,
                                        preferred_element_type=jnp.float32)
            # PyTorch gate order i | f | g | o; each slice is a 128-lane tile.
            i = jax.nn.sigmoid(gates[:, 0 * Hp:1 * Hp])
            f = jax.nn.sigmoid(gates[:, 1 * Hp:2 * Hp])
            g = jnp.tanh(gates[:, 2 * Hp:3 * Hp])
            o = jax.nn.sigmoid(gates[:, 3 * Hp:4 * Hp])
            c_new = f * c_ref[...] + i * g
            h_new = o * jnp.tanh(c_new)
            c_ref[...] = c_new
            h_ref[...] = h_new
            return carry
        # Bounded unroll: enough to overlap adjacent steps' MXU/EUP work
        # without blowing the 64-vreg budget on large (Bt, 4Hp) intermediates.
        lax.fori_loop(0, n_steps, step, 0, unroll=min(8, n_steps))

    rem = seq_len % s_chunk
    if rem == 0:
        run_steps(s_chunk)
    else:
        # Only the tail chunk runs fewer (static) steps — no per-step masking.
        is_last = pl.program_id(T_AX) == pl.num_programs(T_AX) - 1

        @pl.when(jnp.logical_not(is_last))
        def _full():
            run_steps(s_chunk)

        @pl.when(is_last)
        def _tail():
            run_steps(rem)

    @pl.when(pl.program_id(T_AX) == pl.num_programs(T_AX) - 1)
    def _finalize():
        out_ref[...] = (jnp.dot(h_ref[...], wfc_ref[...],
                                preferred_element_type=jnp.float32)
                        + bfc_ref[...])


def lstm_model_forward(x, params, *, s_chunk=None, mxu_dtype=jnp.bfloat16):
    """x: (B, S, D) float32 -> (B, O) float32 (matches LSTMModel.forward)."""
    B, S, D = x.shape
    H4, H = params["w_hh"].shape
    assert H4 == 4 * H
    O = params["w_fc"].shape[0]

    f32 = jnp.float32
    w_bytes = jnp.dtype(mxu_dtype).itemsize

    # ---- padding / batch tiling --------------------------------------------
    Bp0 = _round_up(max(B, 8), 8)
    # Split batch into >=2 sublane-aligned tiles when possible so the leading
    # "parallel" grid axis can be sharded across v7x's two TensorCores.
    if Bp0 >= 16:
        Bt = min(_round_up(_cdiv(Bp0, 2), 8), 256)
    else:
        Bt = Bp0
    n_b = _cdiv(Bp0, Bt)
    Bp = n_b * Bt

    Hp = _round_up(H, 128)   # lane-aligned hidden (per-gate 128-lane tiles)
    Op = _round_up(O, 128)   # lane-dense output store

    # ---- VMEM budget -> timesteps per grid step -----------------------------
    vmem_limit = _vmem_limit_bytes()
    resident = 2 * (D * 4 * Hp * w_bytes        # wih
                    + Hp * 4 * Hp * w_bytes     # whh
                    + Hp * Op * 4               # wfc
                    + 4 * Hp * 4 + Op * 4       # biases
                    + Bt * Op * 4)              # out block
    carries = 2 * Bt * Hp * 4                   # h, c scratch
    per_step = 2 * Bt * D * 4 + Bt * 4 * Hp * 4  # streamed x (x2 bufs) + gx
    avail = vmem_limit - resident - carries - (4 << 20)   # headroom
    sc_budget = max(1, avail // per_step)
    sc_cap = 128 if s_chunk is None else max(1, int(s_chunk))
    Sc = int(max(1, min(S, sc_budget, sc_cap)))
    n_chunks = _cdiv(S, Sc)
    Sp = n_chunks * Sc

    # ---- zero-pad weights so padded hidden lanes stay exactly inert ---------
    def pad_gate_cols(w_t):  # (rows, 4H) -> (rows, 4Hp); gate g at [g*Hp, g*Hp+H)
        rows = w_t.shape[0]
        out = jnp.zeros((rows, 4 * Hp), f32)
        for g in range(4):
            out = out.at[:, g * Hp:g * Hp + H].set(w_t[:, g * H:(g + 1) * H])
        return out

    wih_t = params["w_ih"].astype(f32).T                    # (D, 4H)
    whh_t = params["w_hh"].astype(f32).T                    # (H, 4H)
    bias = (params["b_ih"] + params["b_hh"]).astype(f32).reshape(1, 4 * H)

    wih_p = pad_gate_cols(wih_t).astype(mxu_dtype)                          # (D, 4Hp)
    whh_p = (jnp.zeros((Hp, 4 * Hp), f32).at[:H, :]
             .set(pad_gate_cols(whh_t)).astype(mxu_dtype))                  # (Hp, 4Hp)
    bias_p = pad_gate_cols(bias)                                            # (1, 4Hp)
    wfc_p = jnp.zeros((Hp, Op), f32).at[:H, :O].set(params["w_fc"].astype(f32).T)
    bfc_p = jnp.zeros((1, Op), f32).at[:, :O].set(
        params["b_fc"].astype(f32).reshape(1, O))

    # ---- time-major, zero-padded x ------------------------------------------
    x_tm = jnp.transpose(x.astype(f32), (1, 0, 2))          # (S, B, D)
    x_tm = jnp.pad(x_tm, ((0, Sp - S), (0, Bp - B), (0, 0)))  # (Sp, Bp, D)

    kernel = functools.partial(lstm_fused_kernel, seq_len=S, s_chunk=Sc,
                               hidden_pad=Hp, mxu_dtype=mxu_dtype)

    out = pl.pallas_call(
        kernel,
        out_shape=jax.ShapeDtypeStruct((Bp, Op), f32),
        grid_spec=pltpu.PrefetchScalarGridSpec(
            num_scalar_prefetch=0,
            grid=(n_b, n_chunks),
            in_specs=[
                pl.BlockSpec((Sc, Bt, D), lambda b, t: (t, b, 0)),   # streamed x
                pl.BlockSpec((D, 4 * Hp), lambda b, t: (0, 0)),      # wih  (resident)
                pl.BlockSpec((Hp, 4 * Hp), lambda b, t: (0, 0)),     # whh  (resident)
                pl.BlockSpec((Hp, Op), lambda b, t: (0, 0)),         # wfc  (resident)
                pl.BlockSpec((1, 4 * Hp), lambda b, t: (0, 0)),      # bias (resident)
                pl.BlockSpec((1, Op), lambda b, t: (0, 0)),          # bfc  (resident)
            ],
            out_specs=pl.BlockSpec((Bt, Op), lambda b, t: (b, 0)),   # per batch tile
            scratch_shapes=[
                pltpu.VMEM((Sc, Bt, 4 * Hp), f32),   # per-chunk x-projection
                pltpu.VMEM((Bt, Hp), f32),           # h carry
                pltpu.VMEM((Bt, Hp), f32),           # c carry
            ],
        ),
        compiler_params=pltpu.CompilerParams(
            # batch tiles are independent (megacore on v7x); time is serial
            dimension_semantics=("parallel", "arbitrary"),
            vmem_limit_bytes=int(vmem_limit),
        ),
    )(x_tm, wih_p, whh_p, wfc_p, bias_p, bfc_p)

    return out[:B, :O]


def init_params(key, input_dim, hidden_dim, output_dim):
    """Deterministic init mimicking PyTorch uniform(-1/sqrt(H), 1/sqrt(H))."""
    ks = jax.random.split(key, 6)
    k_lstm = 1.0 / jnp.sqrt(hidden_dim)
    k_fc = 1.0 / jnp.sqrt(hidden_dim)
    u = lambda k, shape, bound: jax.random.uniform(
        k, shape, jnp.float32, -bound, bound)
    return {
        "w_ih": u(ks[0], (4 * hidden_dim, input_dim), k_lstm),
        "w_hh": u(ks[1], (4 * hidden_dim, hidden_dim), k_lstm),
        "b_ih": u(ks[2], (4 * hidden_dim,), k_lstm),
        "b_hh": u(ks[3], (4 * hidden_dim,), k_lstm),
        "w_fc": u(ks[4], (output_dim, hidden_dim), k_fc),
        "b_fc": u(ks[5], (output_dim,), k_fc),
    }


def reference_forward(x, params):
    """Pure-JAX reference of the PyTorch LSTMModel forward (for validation)."""
    B, S, D = x.shape
    H = params["w_hh"].shape[1]
    h = jnp.zeros((B, H), jnp.float32)
    c = jnp.zeros((B, H), jnp.float32)
    for t in range(S):
        gates = (x[:, t, :] @ params["w_ih"].T + h @ params["w_hh"].T
                 + params["b_ih"] + params["b_hh"])
        i = jax.nn.sigmoid(gates[:, 0 * H:1 * H])
        f = jax.nn.sigmoid(gates[:, 1 * H:2 * H])
        g = jnp.tanh(gates[:, 2 * H:3 * H])
        o = jax.nn.sigmoid(gates[:, 3 * H:4 * H])
        c = f * c + i * g
        h = o * jnp.tanh(c)
    return h @ params["w_fc"].T + params["b_fc"]


if __name__ == "__main__":
    B, S, D, H, O = 2, 8, 16, 32, 4

    key = jax.random.PRNGKey(0)
    k_x, k_p = jax.random.split(key)
    x = jax.random.normal(k_x, (B, S, D), dtype=jnp.float32)
    params = init_params(k_p, D, H, O)

    y_ref = reference_forward(x, params)

    # Exact-structure check: f32 MXU path matches the reference tightly.
    y_f32 = jax.block_until_ready(
        lstm_model_forward(x, params, mxu_dtype=jnp.float32))
    assert y_f32.shape == (B, O)
    assert jnp.allclose(y_f32, y_ref, atol=2e-5, rtol=2e-5), "f32 path mismatch"

    # Default path (bf16 weights/activations into the MXU, f32 accumulate):
    # tolerance relaxed per bf16 input rounding (~2^-9 relative).
    y = jax.block_until_ready(lstm_model_forward(x, params))
    assert y.shape == (B, O)
    assert jnp.allclose(y, y_ref, atol=5e-2, rtol=5e-2), "bf16 path mismatch"

    print("KERNEL_OK")
</pallas_src>

<mosaic_0001>
module attributes {stable_mosaic.version = 11 : i64} {
  func.func @lstm_fused_kernel(%arg0: i32, %arg1: i32, %arg2: memref<8x8x16xf32, #tpu.memory_space<vmem>>, %arg3: memref<16x512xf32, #tpu.memory_space<vmem>>, %arg4: memref<128x512xf32, #tpu.memory_space<vmem>>, %arg5: memref<128x128xf32, #tpu.memory_space<vmem>>, %arg6: memref<1x512xf32, #tpu.memory_space<vmem>>, %arg7: memref<1x128xf32, #tpu.memory_space<vmem>>, %arg8: memref<8x128xf32, #tpu.memory_space<vmem>>, %arg9: memref<8x8x512xf32, #tpu.memory_space<vmem>>, %arg10: memref<8x128xf32, #tpu.memory_space<vmem>>, %arg11: memref<8x128xf32, #tpu.memory_space<vmem>>) attributes {dimension_semantics = [#tpu.dimension_semantics<parallel>, #tpu.dimension_semantics<arbitrary>], iteration_bounds = array<i64: 1, 1>, scalar_prefetch = 0 : i64, scratch_operands = 3 : i64, tpu.core_type = #tpu.core_type<tc>, window_params = [{transform_indices = @transform_0, window_bounds = array<i64: 8, 8, 16>}, {pipeline_mode = #tpu.pipeline_mode<synchronous>, transform_indices = @transform_1, window_bounds = array<i64: 16, 512>}, {pipeline_mode = #tpu.pipeline_mode<synchronous>, transform_indices = @transform_2, window_bounds = array<i64: 128, 512>}, {pipeline_mode = #tpu.pipeline_mode<synchronous>, transform_indices = @transform_3, window_bounds = array<i64: 128, 128>}, {pipeline_mode = #tpu.pipeline_mode<synchronous>, transform_indices = @transform_4, window_bounds = array<i64: 1, 512>}, {pipeline_mode = #tpu.pipeline_mode<synchronous>, transform_indices = @transform_5, window_bounds = array<i64: 1, 128>}, {transform_indices = @transform_6, window_bounds = array<i64: 8, 128>}]} {
    %c0_i32 = arith.constant 0 : i32
    %0 = arith.cmpi eq, %arg1, %c0_i32 : i32
    %1 = arith.extui %0 : i1 to i32
    %c0_i32_0 = arith.constant 0 : i32
    %2 = arith.cmpi ne, %1, %c0_i32_0 : i32
    scf.if %2 {
      %cst_127 = arith.constant 0.000000e+00 : f32
      %288 = vector.broadcast %cst_127 : f32 to vector<8x128xf32>
      %c0_128 = arith.constant 0 : index
      %c0_129 = arith.constant 0 : index
      %289 = vector.load %arg10[%c0_128, %c0_129] : memref<8x128xf32, #tpu.memory_space<vmem>>, vector<8x128xf32>
      tpu.vector_store %arg10[%c0_128, %c0_129], %288 {strides = array<i32>} : memref<8x128xf32, #tpu.memory_space<vmem>>, vector<8x128xf32>,
      %cst_130 = arith.constant 0.000000e+00 : f32
      %290 = vector.broadcast %cst_130 : f32 to vector<8x128xf32>
      %c0_131 = arith.constant 0 : index
      %c0_132 = arith.constant 0 : index
      %291 = vector.load %arg11[%c0_131, %c0_132] : memref<8x128xf32, #tpu.memory_space<vmem>>, vector<8x128xf32>
      tpu.vector_store %arg11[%c0_131, %c0_132], %290 {strides = array<i32>} : memref<8x128xf32, #tpu.memory_space<vmem>>, vector<8x128xf32>,
    } else {
    }
    %c0 = arith.constant 0 : index
    %c0_1 = arith.constant 0 : index
    %c0_2 = arith.constant 0 : index
    %3 = vector.load %arg2[%c0, %c0_1, %c0_2] : memref<8x8x16xf32, #tpu.memory_space<vmem>>, vector<8x8x16xf32>
    %4 = vector.shape_cast %3 : vector<8x8x16xf32> to vector<64x16xf32>
    %c0_3 = arith.constant 0 : index
    %c0_4 = arith.constant 0 : index
    %5 = vector.load %arg3[%c0_3, %c0_4] : memref<16x512xf32, #tpu.memory_space<vmem>>, vector<16x512xf32>
    %cst = arith.constant dense<0.000000e+00> : vector<64x512xf32>
    %6 = tpu.matmul %4, %5, %cst {dimension_numbers = #tpu.dot_dimension_numbers<[1], [0], [0], [1], [0, 0, 1, 1], [], []>} : vector<64x16xf32>, vector<16x512xf32>, vector<64x512xf32> -> vector<64x512xf32>
    %c0_5 = arith.constant 0 : index
    %c0_6 = arith.constant 0 : index
    %7 = vector.load %arg6[%c0_5, %c0_6] : memref<1x512xf32, #tpu.memory_space<vmem>>, vector<1x512xf32>
    %8 = vector.broadcast %7 : vector<1x512xf32> to vector<64x512xf32>
    %9 = arith.addf %6, %8 : vector<64x512xf32>
    %10 = vector.shape_cast %9 : vector<64x512xf32> to vector<8x8x512xf32>
    %c0_7 = arith.constant 0 : index
    %c0_8 = arith.constant 0 : index
    %c0_9 = arith.constant 0 : index
    %11 = vector.load %arg9[%c0_7, %c0_8, %c0_9] : memref<8x8x512xf32, #tpu.memory_space<vmem>>, vector<8x8x512xf32>
    tpu.vector_store %arg9[%c0_7, %c0_8, %c0_9], %10 {strides = array<i32>} : memref<8x8x512xf32, #tpu.memory_space<vmem>>, vector<8x8x512xf32>,
    %c0_10 = arith.constant 0 : index
    %c0_11 = arith.constant 0 : index
    %12 = vector.load %arg4[%c0_10, %c0_11] : memref<128x512xf32, #tpu.memory_space<vmem>>, vector<128x512xf32>
    %c0_i32_12 = arith.constant 0 : i32
    %c0_13 = arith.constant 0 : index
    %c0_14 = arith.constant 0 : index
    %13 = vector.load %arg10[%c0_13, %c0_14] : memref<8x128xf32, #tpu.memory_space<vmem>>, vector<8x128xf32>
    %14 = arith.index_cast %c0_i32_12 : i32 to index
    %c0_15 = arith.constant 0 : index
    %c0_16 = arith.constant 0 : index
    %15 = vector.load %arg9[%14, %c0_15, %c0_16] : memref<8x8x512xf32, #tpu.memory_space<vmem>>, vector<1x8x512xf32>
    %16 = vector.shape_cast %15 : vector<1x8x512xf32> to vector<8x512xf32>
    %cst_17 = arith.constant dense<0.000000e+00> : vector<8x512xf32>
    %17 = tpu.matmul %13, %12, %cst_17 {dimension_numbers = #tpu.dot_dimension_numbers<[1], [0], [0], [1], [0, 0, 1, 1], [], []>} : vector<8x128xf32>, vector<128x512xf32>, vector<8x512xf32> -> vector<8x512xf32>
    %18 = arith.addf %16, %17 : vector<8x512xf32>
    %19 = vector.extract_strided_slice %18 {offsets = [0, 0], sizes = [8, 128], strides = [1, 1]} : vector<8x512xf32> to vector<8x128xf32>
    %20 = arith.negf %19 : vector<8x128xf32>
    %21 = math.exp %20 : vector<8x128xf32>
    %cst_18 = arith.constant 1.000000e+00 : f32
    %22 = vector.broadcast %cst_18 : f32 to vector<8x128xf32>
    %23 = arith.addf %22, %21 : vector<8x128xf32>
    %24 = arith.divf %22, %23 : vector<8x128xf32>
    %25 = vector.extract_strided_slice %18 {offsets = [0, 128], sizes = [8, 128], strides = [1, 1]} : vector<8x512xf32> to vector<8x128xf32>
    %26 = arith.negf %25 : vector<8x128xf32>
    %27 = math.exp %26 : vector<8x128xf32>
    %cst_19 = arith.constant 1.000000e+00 : f32
    %28 = vector.broadcast %cst_19 : f32 to vector<8x128xf32>
    %29 = arith.addf %28, %27 : vector<8x128xf32>
    %30 = arith.divf %28, %29 : vector<8x128xf32>
    %31 = vector.extract_strided_slice %18 {offsets = [0, 256], sizes = [8, 128], strides = [1, 1]} : vector<8x512xf32> to vector<8x128xf32>
    %32 = math.tanh %31 : vector<8x128xf32>
    %33 = vector.extract_strided_slice %18 {offsets = [0, 384], sizes = [8, 128], strides = [1, 1]} : vector<8x512xf32> to vector<8x128xf32>
    %34 = arith.negf %33 : vector<8x128xf32>
    %35 = math.exp %34 : vector<8x128xf32>
    %cst_20 = arith.constant 1.000000e+00 : f32
    %36 = vector.broadcast %cst_20 : f32 to vector<8x128xf32>
    %37 = arith.addf %36, %35 : vector<8x128xf32>
    %38 = arith.divf %36, %37 : vector<8x128xf32>
    %c0_21 = arith.constant 0 : index
    %c0_22 = arith.constant 0 : index
    %39 = vector.load %arg11[%c0_21, %c0_22] : memref<8x128xf32, #tpu.memory_space<vmem>>, vector<8x128xf32>
    %40 = arith.mulf %30, %39 : vector<8x128xf32>
    %41 = arith.mulf %24, %32 : vector<8x128xf32>
    %42 = arith.addf %40, %41 : vector<8x128xf32>
    %43 = math.tanh %42 : vector<8x128xf32>
    %44 = arith.mulf %38, %43 : vector<8x128xf32>
    %c0_23 = arith.constant 0 : index
    %c0_24 = arith.constant 0 : index
    %45 = vector.load %arg11[%c0_23, %c0_24] : memref<8x128xf32, #tpu.memory_space<vmem>>, vector<8x128xf32>
    tpu.vector_store %arg11[%c0_23, %c0_24], %42 {strides = array<i32>} : memref<8x128xf32, #tpu.memory_space<vmem>>, vector<8x128xf32>,
    %c0_25 = arith.constant 0 : index
    %c0_26 = arith.constant 0 : index
    %46 = vector.load %arg10[%c0_25, %c0_26] : memref<8x128xf32, #tpu.memory_space<vmem>>, vector<8x128xf32>
    tpu.vector_store %arg10[%c0_25, %c0_26], %44 {strides = array<i32>} : memref<8x128xf32, #tpu.memory_space<vmem>>, vector<8x128xf32>,
    %c1_i32 = arith.constant 1 : i32
    %c0_27 = arith.constant 0 : index
    %c0_28 = arith.constant 0 : index
    %47 = vector.load %arg10[%c0_27, %c0_28] : memref<8x128xf32, #tpu.memory_space<vmem>>, vector<8x128xf32>
    %48 = arith.index_cast %c1_i32 : i32 to index
    %c0_29 = arith.constant 0 : index
    %c0_30 = arith.constant 0 : index
    %49 = vector.load %arg9[%48, %c0_29, %c0_30] : memref<8x8x512xf32, #tpu.memory_space<vmem>>, vector<1x8x512xf32>
    %50 = vector.shape_cast %49 : vector<1x8x512xf32> to vector<8x512xf32>
    %cst_31 = arith.constant dense<0.000000e+00> : vector<8x512xf32>
    %51 = tpu.matmul %47, %12, %cst_31 {dimension_numbers = #tpu.dot_dimension_numbers<[1], [0], [0], [1], [0, 0, 1, 1], [], []>} : vector<8x128xf32>, vector<128x512xf32>, vector<8x512xf32> -> vector<8x512xf32>
    %52 = arith.addf %50, %51 : vector<8x512xf32>
    %53 = vector.extract_strided_slice %52 {offsets = [0, 0], sizes = [8, 128], strides = [1, 1]} : vector<8x512xf32> to vector<8x128xf32>
    %54 = arith.negf %53 : vector<8x128xf32>
    %55 = math.exp %54 : vector<8x128xf32>
    %cst_32 = arith.constant 1.000000e+00 : f32
    %56 = vector.broadcast %cst_32 : f32 to vector<8x128xf32>
    %57 = arith.addf %56, %55 : vector<8x128xf32>
    %58 = arith.divf %56, %57 : vector<8x128xf32>
    %59 = vector.extract_strided_slice %52 {offsets = [0, 128], sizes = [8, 128], strides = [1, 1]} : vector<8x512xf32> to vector<8x128xf32>
    %60 = arith.negf %59 : vector<8x128xf32>
    %61 = math.exp %60 : vector<8x128xf32>
    %cst_33 = arith.constant 1.000000e+00 : f32
    %62 = vector.broadcast %cst_33 : f32 to vector<8x128xf32>
    %63 = arith.addf %62, %61 : vector<8x128xf32>
    %64 = arith.divf %62, %63 : vector<8x128xf32>
    %65 = vector.extract_strided_slice %52 {offsets = [0, 256], sizes = [8, 128], strides = [1, 1]} : vector<8x512xf32> to vector<8x128xf32>
    %66 = math.tanh %65 : vector<8x128xf32>
    %67 = vector.extract_strided_slice %52 {offsets = [0, 384], sizes = [8, 128], strides = [1, 1]} : vector<8x512xf32> to vector<8x128xf32>
    %68 = arith.negf %67 : vector<8x128xf32>
    %69 = math.exp %68 : vector<8x128xf32>
    %cst_34 = arith.constant 1.000000e+00 : f32
    %70 = vector.broadcast %cst_34 : f32 to vector<8x128xf32>
    %71 = arith.addf %70, %69 : vector<8x128xf32>
    %72 = arith.divf %70, %71 : vector<8x128xf32>
    %c0_35 = arith.constant 0 : index
    %c0_36 = arith.constant 0 : index
    %73 = vector.load %arg11[%c0_35, %c0_36] : memref<8x128xf32, #tpu.memory_space<vmem>>, vector<8x128xf32>
    %74 = arith.mulf %64, %73 : vector<8x128xf32>
    %75 = arith.mulf %58, %66 : vector<8x128xf32>
    %76 = arith.addf %74, %75 : vector<8x128xf32>
    %77 = math.tanh %76 : vector<8x128xf32>
    %78 = arith.mulf %72, %77 : vector<8x128xf32>
    %c0_37 = arith.constant 0 : index
    %c0_38 = arith.constant 0 : index
    %79 = vector.load %arg11[%c0_37, %c0_38] : memref<8x128xf32, #tpu.memory_space<vmem>>, vector<8x128xf32>
    tpu.vector_store %arg11[%c0_37, %c0_38], %76 {strides = array<i32>} : memref<8x128xf32, #tpu.memory_space<vmem>>, vector<8x128xf32>,
    %c0_39 = arith.constant 0 : index
    %c0_40 = arith.constant 0 : index
    %80 = vector.load %arg10[%c0_39, %c0_40] : memref<8x128xf32, #tpu.memory_space<vmem>>, vector<8x128xf32>
    tpu.vector_store %arg10[%c0_39, %c0_40], %78 {strides = array<i32>} : memref<8x128xf32, #tpu.memory_space<vmem>>, vector<8x128xf32>,
    %c2_i32 = arith.constant 2 : i32
    %c0_41 = arith.constant 0 : index
    %c0_42 = arith.constant 0 : index
    %81 = vector.load %arg10[%c0_41, %c0_42] : memref<8x128xf32, #tpu.memory_space<vmem>>, vector<8x128xf32>
    %82 = arith.index_cast %c2_i32 : i32 to index
    %c0_43 = arith.constant 0 : index
    %c0_44 = arith.constant 0 : index
    %83 = vector.load %arg9[%82, %c0_43, %c0_44] : memref<8x8x512xf32, #tpu.memory_space<vmem>>, vector<1x8x512xf32>
    %84 = vector.shape_cast %83 : vector<1x8x512xf32> to vector<8x512xf32>
    %cst_45 = arith.constant dense<0.000000e+00> : vector<8x512xf32>
    %85 = tpu.matmul %81, %12, %cst_45 {dimension_numbers = #tpu.dot_dimension_numbers<[1], [0], [0], [1], [0, 0, 1, 1], [], []>} : vector<8x128xf32>, vector<128x512xf32>, vector<8x512xf32> -> vector<8x512xf32>
    %86 = arith.addf %84, %85 : vector<8x512xf32>
    %87 = vector.extract_strided_slice %86 {offsets = [0, 0], sizes = [8, 128], strides = [1, 1]} : vector<8x512xf32> to vector<8x128xf32>
    %88 = arith.negf %87 : vector<8x128xf32>
    %89 = math.exp %88 : vector<8x128xf32>
    %cst_46 = arith.constant 1.000000e+00 : f32
    %90 = vector.broadcast %cst_46 : f32 to vector<8x128xf32>
    %91 = arith.addf %90, %89 : vector<8x128xf32>
    %92 = arith.divf %90, %91 : vector<8x128xf32>
    %93 = vector.extract_strided_slice %86 {offsets = [0, 128], sizes = [8, 128], strides = [1, 1]} : vector<8x512xf32> to vector<8x128xf32>
    %94 = arith.negf %93 : vector<8x128xf32>
    %95 = math.exp %94 : vector<8x128xf32>
    %cst_47 = arith.constant 1.000000e+00 : f32
    %96 = vector.broadcast %cst_47 : f32 to vector<8x128xf32>
    %97 = arith.addf %96, %95 : vector<8x128xf32>
    %98 = arith.divf %96, %97 : vector<8x128xf32>
    %99 = vector.extract_strided_slice %86 {offsets = [0, 256], sizes = [8, 128], strides = [1, 1]} : vector<8x512xf32> to vector<8x128xf32>
    %100 = math.tanh %99 : vector<8x128xf32>
    %101 = vector.extract_strided_slice %86 {offsets = [0, 384], sizes = [8, 128], strides = [1, 1]} : vector<8x512xf32> to vector<8x128xf32>
    %102 = arith.negf %101 : vector<8x128xf32>
    %103 = math.exp %102 : vector<8x128xf32>
    %cst_48 = arith.constant 1.000000e+00 : f32
    %104 = vector.broadcast %cst_48 : f32 to vector<8x128xf32>
    %105 = arith.addf %104, %103 : vector<8x128xf32>
    %106 = arith.divf %104, %105 : vector<8x128xf32>
    %c0_49 = arith.constant 0 : index
    %c0_50 = arith.constant 0 : index
    %107 = vector.load %arg11[%c0_49, %c0_50] : memref<8x128xf32, #tpu.memory_space<vmem>>, vector<8x128xf32>
    %108 = arith.mulf %98, %107 : vector<8x128xf32>
    %109 = arith.mulf %92, %100 : vector<8x128xf32>
    %110 = arith.addf %108, %109 : vector<8x128xf32>
    %111 = math.tanh %110 : vector<8x128xf32>
    %112 = arith.mulf %106, %111 : vector<8x128xf32>
    %c0_51 = arith.constant 0 : index
    %c0_52 = arith.constant 0 : index
    %113 = vector.load %arg11[%c0_51, %c0_52] : memref<8x128xf32, #tpu.memory_space<vmem>>, vector<8x128xf32>
    tpu.vector_store %arg11[%c0_51, %c0_52], %110 {strides = array<i32>} : memref<8x128xf32, #tpu.memory_space<vmem>>, vector<8x128xf32>,
    %c0_53 = arith.constant 0 : index
    %c0_54 = arith.constant 0 : index
    %114 = vector.load %arg10[%c0_53, %c0_54] : memref<8x128xf32, #tpu.memory_space<vmem>>, vector<8x128xf32>
    tpu.vector_store %arg10[%c0_53, %c0_54], %112 {strides = array<i32>} : memref<8x128xf32, #tpu.memory_space<vmem>>, vector<8x128xf32>,
    %c3_i32 = arith.constant 3 : i32
    %c0_55 = arith.constant 0 : index
    %c0_56 = arith.constant 0 : index
    %115 = vector.load %arg10[%c0_55, %c0_56] : memref<8x128xf32, #tpu.memory_space<vmem>>, vector<8x128xf32>
    %116 = arith.index_cast %c3_i32 : i32 to index
    %c0_57 = arith.constant 0 : index
    %c0_58 = arith.constant 0 : index
    %117 = vector.load %arg9[%116, %c0_57, %c0_58] : memref<8x8x512xf32, #tpu.memory_space<vmem>>, vector<1x8x512xf32>
    %118 = vector.shape_cast %117 : vector<1x8x512xf32> to vector<8x512xf32>
    %cst_59 = arith.constant dense<0.000000e+00> : vector<8x512xf32>
    %119 = tpu.matmul %115, %12, %cst_59 {dimension_numbers = #tpu.dot_dimension_numbers<[1], [0], [0], [1], [0, 0, 1, 1], [], []>} : vector<8x128xf32>, vector<128x512xf32>, vector<8x512xf32> -> vector<8x512xf32>
    %120 = arith.addf %118, %119 : vector<8x512xf32>
    %121 = vector.extract_strided_slice %120 {offsets = [0, 0], sizes = [8, 128], strides = [1, 1]} : vector<8x512xf32> to vector<8x128xf32>
    %122 = arith.negf %121 : vector<8x128xf32>
    %123 = math.exp %122 : vector<8x128xf32>
    %cst_60 = arith.constant 1.000000e+00 : f32
    %124 = vector.broadcast %cst_60 : f32 to vector<8x128xf32>
    %125 = arith.addf %124, %123 : vector<8x128xf32>
    %126 = arith.divf %124, %125 : vector<8x128xf32>
    %127 = vector.extract_strided_slice %120 {offsets = [0, 128], sizes = [8, 128], strides = [1, 1]} : vector<8x512xf32> to vector<8x128xf32>
    %128 = arith.negf %127 : vector<8x128xf32>
    %129 = math.exp %128 : vector<8x128xf32>
    %cst_61 = arith.constant 1.000000e+00 : f32
    %130 = vector.broadcast %cst_61 : f32 to vector<8x128xf32>
    %131 = arith.addf %130, %129 : vector<8x128xf32>
    %132 = arith.divf %130, %131 : vector<8x128xf32>
    %133 = vector.extract_strided_slice %120 {offsets = [0, 256], sizes = [8, 128], strides = [1, 1]} : vector<8x512xf32> to vector<8x128xf32>
    %134 = math.tanh %133 : vector<8x128xf32>
    %135 = vector.extract_strided_slice %120 {offsets = [0, 384], sizes = [8, 128], strides = [1, 1]} : vector<8x512xf32> to vector<8x128xf32>
    %136 = arith.negf %135 : vector<8x128xf32>
    %137 = math.exp %136 : vector<8x128xf32>
    %cst_62 = arith.constant 1.000000e+00 : f32
    %138 = vector.broadcast %cst_62 : f32 to vector<8x128xf32>
    %139 = arith.addf %138, %137 : vector<8x128xf32>
    %140 = arith.divf %138, %139 : vector<8x128xf32>
    %c0_63 = arith.constant 0 : index
    %c0_64 = arith.constant 0 : index
    %141 = vector.load %arg11[%c0_63, %c0_64] : memref<8x128xf32, #tpu.memory_space<vmem>>, vector<8x128xf32>
    %142 = arith.mulf %132, %141 : vector<8x128xf32>
    %143 = arith.mulf %126, %134 : vector<8x128xf32>
    %144 = arith.addf %142, %143 : vector<8x128xf32>
    %145 = math.tanh %144 : vector<8x128xf32>
    %146 = arith.mulf %140, %145 : vector<8x128xf32>
    %c0_65 = arith.constant 0 : index
    %c0_66 = arith.constant 0 : index
    %147 = vector.load %arg11[%c0_65, %c0_66] : memref<8x128xf32, #tpu.memory_space<vmem>>, vector<8x128xf32>
    tpu.vector_store %arg11[%c0_65, %c0_66], %144 {strides = array<i32>} : memref<8x128xf32, #tpu.memory_space<vmem>>, vector<8x128xf32>,
    %c0_67 = arith.constant 0 : index
    %c0_68 = arith.constant 0 : index
    %148 = vector.load %arg10[%c0_67, %c0_68] : memref<8x128xf32, #tpu.memory_space<vmem>>, vector<8x128xf32>
    tpu.vector_store %arg10[%c0_67, %c0_68], %146 {strides = array<i32>} : memref<8x128xf32, #tpu.memory_space<vmem>>, vector<8x128xf32>,
    %c4_i32 = arith.constant 4 : i32
    %c0_69 = arith.constant 0 : index
    %c0_70 = arith.constant 0 : index
    %149 = vector.load %arg10[%c0_69, %c0_70] : memref<8x128xf32, #tpu.memory_space<vmem>>, vector<8x128xf32>
    %150 = arith.index_cast %c4_i32 : i32 to index
    %c0_71 = arith.constant 0 : index
    %c0_72 = arith.constant 0 : index
    %151 = vector.load %arg9[%150, %c0_71, %c0_72] : memref<8x8x512xf32, #tpu.memory_space<vmem>>, vector<1x8x512xf32>
    %152 = vector.shape_cast %151 : vector<1x8x512xf32> to vector<8x512xf32>
    %cst_73 = arith.constant dense<0.000000e+00> : vector<8x512xf32>
    %153 = tpu.matmul %149, %12, %cst_73 {dimension_numbers = #tpu.dot_dimension_numbers<[1], [0], [0], [1], [0, 0, 1, 1], [], []>} : vector<8x128xf32>, vector<128x512xf32>, vector<8x512xf32> -> vector<8x512xf32>
    %154 = arith.addf %152, %153 : vector<8x512xf32>
    %155 = vector.extract_strided_slice %154 {offsets = [0, 0], sizes = [8, 128], strides = [1, 1]} : vector<8x512xf32> to vector<8x128xf32>
    %156 = arith.negf %155 : vector<8x128xf32>
    %157 = math.exp %156 : vector<8x128xf32>
    %cst_74 = arith.constant 1.000000e+00 : f32
    %158 = vector.broadcast %cst_74 : f32 to vector<8x128xf32>
    %159 = arith.addf %158, %157 : vector<8x128xf32>
    %160 = arith.divf %158, %159 : vector<8x128xf32>
    %161 = vector.extract_strided_slice %154 {offsets = [0, 128], sizes = [8, 128], strides = [1, 1]} : vector<8x512xf32> to vector<8x128xf32>
    %162 = arith.negf %161 : vector<8x128xf32>
    %163 = math.exp %162 : vector<8x128xf32>
    %cst_75 = arith.constant 1.000000e+00 : f32
    %164 = vector.broadcast %cst_75 : f32 to vector<8x128xf32>
    %165 = arith.addf %164, %163 : vector<8x128xf32>
    %166 = arith.divf %164, %165 : vector<8x128xf32>
    %167 = vector.extract_strided_slice %154 {offsets = [0, 256], sizes = [8, 128], strides = [1, 1]} : vector<8x512xf32> to vector<8x128xf32>
    %168 = math.tanh %167 : vector<8x128xf32>
    %169 = vector.extract_strided_slice %154 {offsets = [0, 384], sizes = [8, 128], strides = [1, 1]} : vector<8x512xf32> to vector<8x128xf32>
    %170 = arith.negf %169 : vector<8x128xf32>
    %171 = math.exp %170 : vector<8x128xf32>
    %cst_76 = arith.constant 1.000000e+00 : f32
    %172 = vector.broadcast %cst_76 : f32 to vector<8x128xf32>
    %173 = arith.addf %172, %171 : vector<8x128xf32>
    %174 = arith.divf %172, %173 : vector<8x128xf32>
    %c0_77 = arith.constant 0 : index
    %c0_78 = arith.constant 0 : index
    %175 = vector.load %arg11[%c0_77, %c0_78] : memref<8x128xf32, #tpu.memory_space<vmem>>, vector<8x128xf32>
    %176 = arith.mulf %166, %175 : vector<8x128xf32>
    %177 = arith.mulf %160, %168 : vector<8x128xf32>
    %178 = arith.addf %176, %177 : vector<8x128xf32>
    %179 = math.tanh %178 : vector<8x128xf32>
    %180 = arith.mulf %174, %179 : vector<8x128xf32>
    %c0_79 = arith.constant 0 : index
    %c0_80 = arith.constant 0 : index
    %181 = vector.load %arg11[%c0_79, %c0_80] : memref<8x128xf32, #tpu.memory_space<vmem>>, vector<8x128xf32>
    tpu.vector_store %arg11[%c0_79, %c0_80], %178 {strides = array<i32>} : memref<8x128xf32, #tpu.memory_space<vmem>>, vector<8x128xf32>,
    %c0_81 = arith.constant 0 : index
    %c0_82 = arith.constant 0 : index
    %182 = vector.load %arg10[%c0_81, %c0_82] : memref<8x128xf32, #tpu.memory_space<vmem>>, vector<8x128xf32>
    tpu.vector_store %arg10[%c0_81, %c0_82], %180 {strides = array<i32>} : memref<8x128xf32, #tpu.memory_space<vmem>>, vector<8x128xf32>,
    %c5_i32 = arith.constant 5 : i32
    %c0_83 = arith.constant 0 : index
    %c0_84 = arith.constant 0 : index
    %183 = vector.load %arg10[%c0_83, %c0_84] : memref<8x128xf32, #tpu.memory_space<vmem>>, vector<8x128xf32>
    %184 = arith.index_cast %c5_i32 : i32 to index
    %c0_85 = arith.constant 0 : index
    %c0_86 = arith.constant 0 : index
    %185 = vector.load %arg9[%184, %c0_85, %c0_86] : memref<8x8x512xf32, #tpu.memory_space<vmem>>, vector<1x8x512xf32>
    %186 = vector.shape_cast %185 : vector<1x8x512xf32> to vector<8x512xf32>
    %cst_87 = arith.constant dense<0.000000e+00> : vector<8x512xf32>
    %187 = tpu.matmul %183, %12, %cst_87 {dimension_numbers = #tpu.dot_dimension_numbers<[1], [0], [0], [1], [0, 0, 1, 1], [], []>} : vector<8x128xf32>, vector<128x512xf32>, vector<8x512xf32> -> vector<8x512xf32>
    %188 = arith.addf %186, %187 : vector<8x512xf32>
    %189 = vector.extract_strided_slice %188 {offsets = [0, 0], sizes = [8, 128], strides = [1, 1]} : vector<8x512xf32> to vector<8x128xf32>
    %190 = arith.negf %189 : vector<8x128xf32>
    %191 = math.exp %190 : vector<8x128xf32>
    %cst_88 = arith.constant 1.000000e+00 : f32
    %192 = vector.broadcast %cst_88 : f32 to vector<8x128xf32>
    %193 = arith.addf %192, %191 : vector<8x128xf32>
    %194 = arith.divf %192, %193 : vector<8x128xf32>
    %195 = vector.extract_strided_slice %188 {offsets = [0, 128], sizes = [8, 128], strides = [1, 1]} : vector<8x512xf32> to vector<8x128xf32>
    %196 = arith.negf %195 : vector<8x128xf32>
    %197 = math.exp %196 : vector<8x128xf32>
    %cst_89 = arith.constant 1.000000e+00 : f32
    %198 = vector.broadcast %cst_89 : f32 to vector<8x128xf32>
    %199 = arith.addf %198, %197 : vector<8x128xf32>
    %200 = arith.divf %198, %199 : vector<8x128xf32>
    %201 = vector.extract_strided_slice %188 {offsets = [0, 256], sizes = [8, 128], strides = [1, 1]} : vector<8x512xf32> to vector<8x128xf32>
    %202 = math.tanh %201 : vector<8x128xf32>
    %203 = vector.extract_strided_slice %188 {offsets = [0, 384], sizes = [8, 128], strides = [1, 1]} : vector<8x512xf32> to vector<8x128xf32>
    %204 = arith.negf %203 : vector<8x128xf32>
    %205 = math.exp %204 : vector<8x128xf32>
    %cst_90 = arith.constant 1.000000e+00 : f32
    %206 = vector.broadcast %cst_90 : f32 to vector<8x128xf32>
    %207 = arith.addf %206, %205 : vector<8x128xf32>
    %208 = arith.divf %206, %207 : vector<8x128xf32>
    %c0_91 = arith.constant 0 : index
    %c0_92 = arith.constant 0 : index
    %209 = vector.load %arg11[%c0_91, %c0_92] : memref<8x128xf32, #tpu.memory_space<vmem>>, vector<8x128xf32>
    %210 = arith.mulf %200, %209 : vector<8x128xf32>
    %211 = arith.mulf %194, %202 : vector<8x128xf32>
    %212 = arith.addf %210, %211 : vector<8x128xf32>
    %213 = math.tanh %212 : vector<8x128xf32>
    %214 = arith.mulf %208, %213 : vector<8x128xf32>
    %c0_93 = arith.constant 0 : index
    %c0_94 = arith.constant 0 : index
    %215 = vector.load %arg11[%c0_93, %c0_94] : memref<8x128xf32, #tpu.memory_space<vmem>>, vector<8x128xf32>
    tpu.vector_store %arg11[%c0_93, %c0_94], %212 {strides = array<i32>} : memref<8x128xf32, #tpu.memory_space<vmem>>, vector<8x128xf32>,
    %c0_95 = arith.constant 0 : index
    %c0_96 = arith.constant 0 : index
    %216 = vector.load %arg10[%c0_95, %c0_96] : memref<8x128xf32, #tpu.memory_space<vmem>>, vector<8x128xf32>
    tpu.vector_store %arg10[%c0_95, %c0_96], %214 {strides = array<i32>} : memref<8x128xf32, #tpu.memory_space<vmem>>, vector<8x128xf32>,
    %c6_i32 = arith.constant 6 : i32
    %c0_97 = arith.constant 0 : index
    %c0_98 = arith.constant 0 : index
    %217 = vector.load %arg10[%c0_97, %c0_98] : memref<8x128xf32, #tpu.memory_space<vmem>>, vector<8x128xf32>
    %218 = arith.index_cast %c6_i32 : i32 to index
    %c0_99 = arith.constant 0 : index
    %c0_100 = arith.constant 0 : index
    %219 = vector.load %arg9[%218, %c0_99, %c0_100] : memref<8x8x512xf32, #tpu.memory_space<vmem>>, vector<1x8x512xf32>
    %220 = vector.shape_cast %219 : vector<1x8x512xf32> to vector<8x512xf32>
    %cst_101 = arith.constant dense<0.000000e+00> : vector<8x512xf32>
    %221 = tpu.matmul %217, %12, %cst_101 {dimension_numbers = #tpu.dot_dimension_numbers<[1], [0], [0], [1], [0, 0, 1, 1], [], []>} : vector<8x128xf32>, vector<128x512xf32>, vector<8x512xf32> -> vector<8x512xf32>
    %222 = arith.addf %220, %221 : vector<8x512xf32>
    %223 = vector.extract_strided_slice %222 {offsets = [0, 0], sizes = [8, 128], strides = [1, 1]} : vector<8x512xf32> to vector<8x128xf32>
    %224 = arith.negf %223 : vector<8x128xf32>
    %225 = math.exp %224 : vector<8x128xf32>
    %cst_102 = arith.constant 1.000000e+00 : f32
    %226 = vector.broadcast %cst_102 : f32 to vector<8x128xf32>
    %227 = arith.addf %226, %225 : vector<8x128xf32>
    %228 = arith.divf %226, %227 : vector<8x128xf32>
    %229 = vector.extract_strided_slice %222 {offsets = [0, 128], sizes = [8, 128], strides = [1, 1]} : vector<8x512xf32> to vector<8x128xf32>
    %230 = arith.negf %229 : vector<8x128xf32>
    %231 = math.exp %230 : vector<8x128xf32>
    %cst_103 = arith.constant 1.000000e+00 : f32
    %232 = vector.broadcast %cst_103 : f32 to vector<8x128xf32>
    %233 = arith.addf %232, %231 : vector<8x128xf32>
    %234 = arith.divf %232, %233 : vector<8x128xf32>
    %235 = vector.extract_strided_slice %222 {offsets = [0, 256], sizes = [8, 128], strides = [1, 1]} : vector<8x512xf32> to vector<8x128xf32>
    %236 = math.tanh %235 : vector<8x128xf32>
    %237 = vector.extract_strided_slice %222 {offsets = [0, 384], sizes = [8, 128], strides = [1, 1]} : vector<8x512xf32> to vector<8x128xf32>
    %238 = arith.negf %237 : vector<8x128xf32>
    %239 = math.exp %238 : vector<8x128xf32>
    %cst_104 = arith.constant 1.000000e+00 : f32
    %240 = vector.broadcast %cst_104 : f32 to vector<8x128xf32>
    %241 = arith.addf %240, %239 : vector<8x128xf32>
    %242 = arith.divf %240, %241 : vector<8x128xf32>
    %c0_105 = arith.constant 0 : index
    %c0_106 = arith.constant 0 : index
    %243 = vector.load %arg11[%c0_105, %c0_106] : memref<8x128xf32, #tpu.memory_space<vmem>>, vector<8x128xf32>
    %244 = arith.mulf %234, %243 : vector<8x128xf32>
    %245 = arith.mulf %228, %236 : vector<8x128xf32>
    %246 = arith.addf %244, %245 : vector<8x128xf32>
    %247 = math.tanh %246 : vector<8x128xf32>
    %248 = arith.mulf %242, %247 : vector<8x128xf32>
    %c0_107 = arith.constant 0 : index
    %c0_108 = arith.constant 0 : index
    %249 = vector.load %arg11[%c0_107, %c0_108] : memref<8x128xf32, #tpu.memory_space<vmem>>, vector<8x128xf32>
    tpu.vector_store %arg11[%c0_107, %c0_108], %246 {strides = array<i32>} : memref<8x128xf32, #tpu.memory_space<vmem>>, vector<8x128xf32>,
    %c0_109 = arith.constant 0 : index
    %c0_110 = arith.constant 0 : index
    %250 = vector.load %arg10[%c0_109, %c0_110] : memref<8x128xf32, #tpu.memory_space<vmem>>, vector<8x128xf32>
    tpu.vector_store %arg10[%c0_109, %c0_110], %248 {strides = array<i32>} : memref<8x128xf32, #tpu.memory_space<vmem>>, vector<8x128xf32>,
    %c7_i32 = arith.constant 7 : i32
    %c0_111 = arith.constant 0 : index
    %c0_112 = arith.constant 0 : index
    %251 = vector.load %arg10[%c0_111, %c0_112] : memref<8x128xf32, #tpu.memory_space<vmem>>, vector<8x128xf32>
    %252 = arith.index_cast %c7_i32 : i32 to index
    %c0_113 = arith.constant 0 : index
    %c0_114 = arith.constant 0 : index
    %253 = vector.load %arg9[%252, %c0_113, %c0_114] : memref<8x8x512xf32, #tpu.memory_space<vmem>>, vector<1x8x512xf32>
    %254 = vector.shape_cast %253 : vector<1x8x512xf32> to vector<8x512xf32>
    %cst_115 = arith.constant dense<0.000000e+00> : vector<8x512xf32>
    %255 = tpu.matmul %251, %12, %cst_115 {dimension_numbers = #tpu.dot_dimension_numbers<[1], [0], [0], [1], [0, 0, 1, 1], [], []>} : vector<8x128xf32>, vector<128x512xf32>, vector<8x512xf32> -> vector<8x512xf32>
    %256 = arith.addf %254, %255 : vector<8x512xf32>
    %257 = vector.extract_strided_slice %256 {offsets = [0, 0], sizes = [8, 128], strides = [1, 1]} : vector<8x512xf32> to vector<8x128xf32>
    %258 = arith.negf %257 : vector<8x128xf32>
    %259 = math.exp %258 : vector<8x128xf32>
    %cst_116 = arith.constant 1.000000e+00 : f32
    %260 = vector.broadcast %cst_116 : f32 to vector<8x128xf32>
    %261 = arith.addf %260, %259 : vector<8x128xf32>
    %262 = arith.divf %260, %261 : vector<8x128xf32>
    %263 = vector.extract_strided_slice %256 {offsets = [0, 128], sizes = [8, 128], strides = [1, 1]} : vector<8x512xf32> to vector<8x128xf32>
    %264 = arith.negf %263 : vector<8x128xf32>
    %265 = math.exp %264 : vector<8x128xf32>
    %cst_117 = arith.constant 1.000000e+00 : f32
    %266 = vector.broadcast %cst_117 : f32 to vector<8x128xf32>
    %267 = arith.addf %266, %265 : vector<8x128xf32>
    %268 = arith.divf %266, %267 : vector<8x128xf32>
    %269 = vector.extract_strided_slice %256 {offsets = [0, 256], sizes = [8, 128], strides = [1, 1]} : vector<8x512xf32> to vector<8x128xf32>
    %270 = math.tanh %269 : vector<8x128xf32>
    %271 = vector.extract_strided_slice %256 {offsets = [0, 384], sizes = [8, 128], strides = [1, 1]} : vector<8x512xf32> to vector<8x128xf32>
    %272 = arith.negf %271 : vector<8x128xf32>
    %273 = math.exp %272 : vector<8x128xf32>
    %cst_118 = arith.constant 1.000000e+00 : f32
    %274 = vector.broadcast %cst_118 : f32 to vector<8x128xf32>
    %275 = arith.addf %274, %273 : vector<8x128xf32>
    %276 = arith.divf %274, %275 : vector<8x128xf32>
    %c0_119 = arith.constant 0 : index
    %c0_120 = arith.constant 0 : index
    %277 = vector.load %arg11[%c0_119, %c0_120] : memref<8x128xf32, #tpu.memory_space<vmem>>, vector<8x128xf32>
    %278 = arith.mulf %268, %277 : vector<8x128xf32>
    %279 = arith.mulf %262, %270 : vector<8x128xf32>
    %280 = arith.addf %278, %279 : vector<8x128xf32>
    %281 = math.tanh %280 : vector<8x128xf32>
    %282 = arith.mulf %276, %281 : vector<8x128xf32>
    %c0_121 = arith.constant 0 : index
    %c0_122 = arith.constant 0 : index
    %283 = vector.load %arg11[%c0_121, %c0_122] : memref<8x128xf32, #tpu.memory_space<vmem>>, vector<8x128xf32>
    tpu.vector_store %arg11[%c0_121, %c0_122], %280 {strides = array<i32>} : memref<8x128xf32, #tpu.memory_space<vmem>>, vector<8x128xf32>,
    %c0_123 = arith.constant 0 : index
    %c0_124 = arith.constant 0 : index
    %284 = vector.load %arg10[%c0_123, %c0_124] : memref<8x128xf32, #tpu.memory_space<vmem>>, vector<8x128xf32>
    tpu.vector_store %arg10[%c0_123, %c0_124], %282 {strides = array<i32>} : memref<8x128xf32, #tpu.memory_space<vmem>>, vector<8x128xf32>,
    %c8_i32 = arith.constant 8 : i32
    %c0_i32_125 = arith.constant 0 : i32
    %285 = arith.cmpi eq, %arg1, %c0_i32_125 : i32
    %286 = arith.extui %285 : i1 to i32
    %c0_i32_126 = arith.constant 0 : i32
    %287 = arith.cmpi ne, %286, %c0_i32_126 : i32
    scf.if %287 {
      %c0_127 = arith.constant 0 : index
      %c0_128 = arith.constant 0 : index
      %288 = vector.load %arg10[%c0_127, %c0_128] : memref<8x128xf32, #tpu.memory_space<vmem>>, vector<8x128xf32>
      %c0_129 = arith.constant 0 : index
      %c0_130 = arith.constant 0 : index
      %289 = vector.load %arg5[%c0_129, %c0_130] : memref<128x128xf32, #tpu.memory_space<vmem>>, vector<128x128xf32>
      %cst_131 = arith.constant dense<0.000000e+00> : vector<8x128xf32>
      %290 = tpu.matmul %288, %289, %cst_131 {dimension_numbers = #tpu.dot_dimension_numbers<[1], [0], [0], [1], [0, 0, 1, 1], [], []>} : vector<8x128xf32>, vector<128x128xf32>, vector<8x128xf32> -> vector<8x128xf32>
      %c0_132 = arith.constant 0 : index
      %c0_133 = arith.constant 0 : index
      %291 = vector.load %arg7[%c0_132, %c0_133] : memref<1x128xf32, #tpu.memory_space<vmem>>, vector<1x128xf32>
      %292 = vector.broadcast %291 : vector<1x128xf32> to vector<8x128xf32>
      %293 = arith.addf %290, %292 : vector<8x128xf32>
      %c0_134 = arith.constant 0 : index
      %c0_135 = arith.constant 0 : index
      %294 = vector.load %arg8[%c0_134, %c0_135] : memref<8x128xf32, #tpu.memory_space<vmem>>, vector<8x128xf32>
      tpu.vector_store %arg8[%c0_134, %c0_135], %293 {strides = array<i32>} : memref<8x128xf32, #tpu.memory_space<vmem>>, vector<8x128xf32>,
    } else {
    }
    return
  }
  func.func @transform_0(%arg0: i32, %arg1: i32) -> (i32, i32, i32) {
    %c0_i32 = arith.constant 0 : i32
    %c0_i32_0 = arith.constant 0 : i32
    return %arg1, %arg0, %c0_i32 : i32, i32, i32
  }
  func.func @transform_1(%arg0: i32, %arg1: i32) -> (i32, i32) {
    %c0_i32 = arith.constant 0 : i32
    %c0_i32_0 = arith.constant 0 : i32
    %c0_i32_1 = arith.constant 0 : i32
    return %c0_i32, %c0_i32_0 : i32, i32
  }
  func.func @transform_2(%arg0: i32, %arg1: i32) -> (i32, i32) {
    %c0_i32 = arith.constant 0 : i32
    %c0_i32_0 = arith.constant 0 : i32
    %c0_i32_1 = arith.constant 0 : i32
    return %c0_i32, %c0_i32_0 : i32, i32
  }
  func.func @transform_3(%arg0: i32, %arg1: i32) -> (i32, i32) {
    %c0_i32 = arith.constant 0 : i32
    %c0_i32_0 = arith.constant 0 : i32
    %c0_i32_1 = arith.constant 0 : i32
    return %c0_i32, %c0_i32_0 : i32, i32
  }
  func.func @transform_4(%arg0: i32, %arg1: i32) -> (i32, i32) {
    %c0_i32 = arith.constant 0 : i32
    %c0_i32_0 = arith.constant 0 : i32
    %c0_i32_1 = arith.constant 0 : i32
    return %c0_i32, %c0_i32_0 : i32, i32
  }
  func.func @transform_5(%arg0: i32, %arg1: i32) -> (i32, i32) {
    %c0_i32 = arith.constant 0 : i32
    %c0_i32_0 = arith.constant 0 : i32
    %c0_i32_1 = arith.constant 0 : i32
    return %c0_i32, %c0_i32_0 : i32, i32
  }
  func.func @transform_6(%arg0: i32, %arg1: i32) -> (i32, i32) {
    %c0_i32 = arith.constant 0 : i32
    %c0_i32_0 = arith.constant 0 : i32
    return %arg0, %c0_i32 : i32, i32
  }
}

</mosaic_0001>

<bundles_post_ra>
// kernel: tpu_custom_call.1
= control target key start
LH: loop header
LB: loop body
LE: loop exit
PB: predicated region body
PF: predicated region fallthrough
CT: control target
= control target key end

     0   :  { %11 = vsyncpa [#allocation6], 0  ;;  %s3546_s0 = inlined_call_operand.hbm [shape: f32[8,8,16], index: 0, kind: input, shape index: {}]   ;;  %s3547_s1 = inlined_call_operand.hbm [shape: f32[16,512], index: 1, kind: input, shape index: {}]   ;;  %s3548_s2 = inlined_call_operand.hbm [shape: f32[128,512], index: 2, kind: input, shape index: {}]   ;;  %s3549_s3 = inlined_call_operand.hbm [shape: f32[128,128], index: 3, kind: input, shape index: {}]   ;;  %s3550_s4 = inlined_call_operand.vmem [shape: f32[1,512], index: 4, kind: input, shape index: {}]   ;;  %s3551_s5 = inlined_call_operand.vmem [shape: f32[1,128], index: 5, kind: input, shape index: {}]   ;;  %s3552_s6 = inlined_call_operand.hbm [shape: f32[8,128], index: 6, kind: output, shape index: {}]  }
   0x1   :  { %12 = vsyncpa [#allocation9], 0 }
   0x2   :  { %13 = vsyncpa [#allocation12], 0 }
   0x3   :  { %14 = vsyncpa [#allocation7], 0  ;;  %s2975_s21 = smov [#allocation8]   ;;  %s2857_s25 = scalar_lea.hbm %s3547_s1, 1024 }
   0x4   :  { %s32_s22 = sshll.u32 %s2975_s21, 4  ;;  %p2858_p0 = scmp.ne.s32.totalorder %s3547_s1, %s2857_s25  ;;  %s33_s22 = int_to_ptr.vmem [resolvable:$true] %s32_s22 }
   0x5   :  { %p2861_p1 = scmp.lt.u32.totalorder %s2857_s25, %s3547_s1 }
   0x7   :  { %p2863_p2 = pnand %p2861_p1, %p2858_p0 }
   0x9   :  { %2866 = shalt.err (!%p2863_p2)
}
   0xa   :  { %s2867_s30 = scalar_lea.vmem %s33_s22, 1024  ;;  %p2872_p4 = scmp.lt.s32.totalorder %s33_s22, %s33_s22 }
   0xb   :  { %p2868_p3 = scmp.ne.s32.totalorder %s33_s22, %s2867_s30  ;;  %p2873_p5 = scmp.lt.s32.totalorder %s2867_s30, %s2867_s30 }
   0xd   :  { %p2874_p6 = por %p2873_p5, %p2872_p4 }
   0xf   :  { %p2875_p7 = pnand %p2874_p6, %p2868_p3 }
  0x11   :  { %2878 = shalt.err (!%p2875_p7)
}
  0x12   :  { %s2976_s7 = smov 512   ;;  %s2977_s8 = smov 32  }
  0x13   :  { %38 = dma.hbm_to_vmem [thread:$0]  %s3547_s1, 1024, %s33_s22, [#allocation9], %s2976_s7, %s2976_s7, %s2977_s8  }
  0x14   :  { %s2978_s11 = smov [#allocation5]   ;;  %s2879_s15 = scalar_lea.hbm %s3546_s0, 1024 }
  0x15   :  { %s20_s12 = sshll.u32 %s2978_s11, 4  ;;  %p2880_p8 = scmp.ne.s32.totalorder %s3546_s0, %s2879_s15  ;;  %s21_s12 = int_to_ptr.vmem [resolvable:$true] %s20_s12 }
  0x16   :  { %p2883_p9 = scmp.lt.u32.totalorder %s2879_s15, %s3546_s0 }
  0x18   :  { %p2885_p10 = pnand %p2883_p9, %p2880_p8 }
  0x1a   :  { %2888 = shalt.err (!%p2885_p10)
}
  0x1b   :  { %s2889_s20 = scalar_lea.vmem %s21_s12, 1024  ;;  %p2894_p12 = scmp.lt.s32.totalorder %s21_s12, %s21_s12 }
  0x1c   :  { %p2890_p11 = scmp.ne.s32.totalorder %s21_s12, %s2889_s20  ;;  %p2895_p13 = scmp.lt.s32.totalorder %s2889_s20, %s2889_s20 }
  0x1e   :  { %p2896_p0 = por %p2895_p13, %p2894_p12 }
  0x20   :  { %p2897_p1 = pnand %p2896_p0, %p2890_p11 }
  0x22   :  { %2900 = shalt.err (!%p2897_p1)
}
  0x23   :  { %s2979_s1 = smov 128   ;;  %s2980_s21 = smov 8  }
  0x24   :  { %26 = dma.hbm_to_vmem [thread:$0]  %s3546_s0, 1024, %s21_s12, [#allocation6], %s2979_s1, %s2979_s1, %s2980_s21  }
  0x25   :  { %s2981_s24 = smov [#allocation10]   ;;  %s2982_s26 = smov [#allocation11]  }
  0x26   :  { %s44_s25 = sshll.u32 %s2981_s24, 4  ;;  %s56_s27 = sshll.u32 %s2982_s26, 4  ;;  %s45_s25 = int_to_ptr.vmem [resolvable:$true] %s44_s25  ;;  %s3052_s27 = int_to_ptr.vmem [resolvable:$true] %s56_s27 }
  0x27   :  { %s2901_s30 = scalar_lea.hbm %s3548_s2, 8192 }
  0x28   :  { %p2902_p2 = scmp.ne.s32.totalorder %s3548_s2, %s2901_s30  ;;  %p2905_p3 = scmp.lt.u32.totalorder %s2901_s30, %s3548_s2 }
  0x2a   :  { %p2907_p4 = pnand %p2905_p3, %p2902_p2 }
  0x2c   :  { %2910 = shalt.err (!%p2907_p4)
}
  0x2d   :  { %s2911_s0 = scalar_lea.vmem %s45_s25, 8192  ;;  %p2916_p6 = scmp.lt.s32.totalorder %s45_s25, %s45_s25 }
  0x2e   :  { %p2912_p5 = scmp.ne.s32.totalorder %s45_s25, %s2911_s0  ;;  %p2917_p7 = scmp.lt.s32.totalorder %s2911_s0, %s2911_s0 }
  0x30   :  { %p2918_p8 = por %p2917_p7, %p2916_p6 }
  0x32   :  { %p2919_p9 = pnand %p2918_p8, %p2912_p5 }
  0x34   :  { %2922 = shalt.err (!%p2919_p9)
}
  0x35   :  { %50 = dma.hbm_to_vmem [thread:$0]  %s3548_s2, 8192, %s45_s25, [#allocation9], %s2976_s7, %s2976_s7, %s2977_s8  }
  0x36   :  { %s2923_s17 = scalar_lea.hbm %s3549_s3, 2048 }
  0x37   :  { %p2924_p10 = scmp.ne.s32.totalorder %s3549_s3, %s2923_s17  ;;  %p2927_p11 = scmp.lt.u32.totalorder %s2923_s17, %s3549_s3 }
  0x39   :  { %p2929_p12 = pnand %p2927_p11, %p2924_p10 }
  0x3b   :  { %2932 = shalt.err (!%p2929_p12)
}
  0x3c   :  { %s2933_s23 = scalar_lea.vmem %s3052_s27, 2048  ;;  %p2938_p0 = scmp.lt.s32.totalorder %s3052_s27, %s3052_s27 }
  0x3d   :  { %p2934_p13 = scmp.ne.s32.totalorder %s3052_s27, %s2933_s23  ;;  %p2939_p1 = scmp.lt.s32.totalorder %s2933_s23, %s2933_s23 }
  0x3f   :  { %p2940_p2 = por %p2939_p1, %p2938_p0 }
  0x41   :  { %p2941_p3 = pnand %p2940_p2, %p2934_p13 }
  0x43   :  { %2944 = shalt.err (!%p2941_p3)
}
  0x44   :  { %62 = dma.hbm_to_vmem [thread:$0]  %s3549_s3, 2048, %s3052_s27, [#allocation12], %s2979_s1, %s2979_s1, %s2980_s21  }
  0x45   :  { %2967 = dma.done.wait [#allocation6], 1024  }
  0x46   :  { %2968 = vsyncadd [#allocation6], 4294966272 }
  0x47   :  { %2969 = dma.done.wait [#allocation9], 9216  }
  0x48   :  { %2970 = vsyncadd [#allocation9], 4294958080 }
  0x49   :  { %2971 = dma.done.wait [#allocation12], 2048  }
  0x4a   :  { %2972 = vsyncadd [#allocation12], 4294965248  ;;  %v2983_v0 = vmov 0.0   ;;  %v94_v1 = vld [vmem:[#allocation8 + $0x8] sm:$0xff]  ;;  %v96_v3 = vld [vmem:[#allocation8 + $0x18] sm:$0xff]  ;;  %vm123_vm0 = vcmask 130048  }
  0x4b   :  { %212 = vmatprep.mubr.f32.mxu0 %v2983_v0  ;;  %325 = vmatprep.mubr.f32.mxu1 %v2983_v0  ;;  %v98_v2 = vld [vmem:[#allocation8 + $0x28] sm:$0xff]  ;;  %v100_v5 = vld [vmem:[#allocation8 + $0x38] sm:$0xff]  ;;  %v93_v6 = vld [vmem:[#allocation8] sm:$0xff]  ;;  %vm2985_vm1 = vmmov 0   ;;  %s2986_s21 = smov [#allocation13]  }
  0x4c   :  { %v2109_v4 = vpack.c.bf16 %v98_v2, %v94_v1  ;;  %v97_v7 = vld [vmem:[#allocation8 + $0x20] sm:$0xff]  ;;  %v2113_v8 = vpack.c.bf16 %v100_v5, %v96_v3  ;;  %v95_v10 = vld [vmem:[#allocation8 + $0x10] sm:$0xff]  ;;  %v407_v14 = vld [vmem:[#allocation10 + $0x8] sm:$0xff]  ;;  %s2005_s24 = sshll.u32 %s2986_s21, 4  ;;  %s2006_s24 = int_to_ptr.vmem [resolvable:$true] %s2005_s24 }
  0x4d   :  { %v2111_v9 = vpack.c.bf16 %v97_v7, %v93_v6  ;;  %v99_v11 = vld [vmem:[#allocation8 + $0x30] sm:$0xff]  ;;  %v85_v12 = vld [vmem:[#allocation5] sm:$0xff]  ;;  %v411_v15 = vld [vmem:[#allocation10 + $0x28] sm:$0xff]  ;;  %s2945_s25 = scalar_lea.vmem %s2006_s24, 128  ;;  %p2950_p5 = scmp.lt.s32.totalorder %s2006_s24, %s2006_s24 }
  0x4e   :  { %2110 = vmatprep.subr.bf16.mxu0 %v2109_v4  ;;  %v2115_v13 = vpack.c.bf16 %v99_v11, %v95_v10  ;;  %v409_v16 = vld [vmem:[#allocation10 + $0x18] sm:$0xff]  ;;  %2114 = vmatprep.subr.bf16.mxu1 %v2113_v8  ;;  %v3091_v17 = vpack.c.bf16 %v411_v15, %v407_v14  ;;  %v406_v19 = vld [vmem:[#allocation10] sm:$0xff]  ;;  %v408_v23 = vld [vmem:[#allocation10 + $0x10] sm:$0xff]  ;;  %p2946_p4 = scmp.ne.s32.totalorder %s2006_s24, %s2945_s25  ;;  %p2951_p6 = scmp.lt.s32.totalorder %s2945_s25, %s2945_s25 }
  0x4f   :  { %2112 = vmatpush1.bf16.msra.mxu0 %v2111_v9  ;;  %v413_v18 = vld [vmem:[#allocation10 + $0x38] sm:$0xff]  ;;  %v410_v20 = vld [vmem:[#allocation10 + $0x20] sm:$0xff]  ;;  %v412_v24 = vld [vmem:[#allocation10 + $0x30] sm:$0xff] }
  0x50   :  { %2116 = vmatpush1.bf16.msra.mxu1 %v2115_v13  ;;  %v3093_v21 = vpack.c.bf16 %v413_v18, %v409_v16  ;;  %v3095_v22 = vpack.c.bf16 %v410_v20, %v406_v19  ;;  %2118 = vmatprep.subr.bf16.mxu0 %v3091_v17  ;;  %v3098_v25 = vpack.c.bf16 %v412_v24, %v408_v23  ;;  %v415_v26 = vld [vmem:[#allocation10 + $0x48] sm:$0xff]  ;;  %v417_v28 = vld [vmem:[#allocation10 + $0x58] sm:$0xff]  ;;  %v414_v31 = vld [vmem:[#allocation10 + $0x40] sm:$0xff]  ;;  %p2952_p7 = por %p2951_p6, %p2950_p5 }
  0x51   :  { %v419_v27 = vld [vmem:[#allocation10 + $0x68] sm:$0xff]  ;;  %v421_v30 = vld [vmem:[#allocation10 + $0x78] sm:$0xff]  ;;  %v418_v32 = vld [vmem:[#allocation10 + $0x60] sm:$0xff] }
  0x52   :  { %2016 = vmatmul.mubr.msk.f32.vlgmr.msra.gmra.mrb[0].mxu0 %vm123_vm0, %v85_v12  ;;  %2150 = vmatprep.subr.bf16.mxu1 %v3093_v21  ;;  %v3102_v29 = vpack.c.bf16 %v419_v27, %v415_v26  ;;  %v86_v33 = vld [vmem:[#allocation5 + $0x8] sm:$0xff]  ;;  %v3106_v34 = vpack.c.bf16 %v421_v30, %v417_v28  ;;  %v3108_v35 = vpack.c.bf16 %v418_v32, %v414_v31  ;;  %v416_v36 = vld [vmem:[#allocation10 + $0x50] sm:$0xff]  ;;  %v425_v41 = vld [vmem:[#allocation10 + $0x98] sm:$0xff]  ;;  %p2953_p8 = pnand %p2952_p7, %p2946_p4 }
  0x53   :  { %2024 = vmatmul.mubr.msk.f32.vlgmr.msra.gmra.mrb[0].mxu1 %vm123_vm0, %v85_v12  ;;  %2120 = vmatpush1.bf16.msra.mxu0 %v3095_v22  ;;  %v420_v37 = vld [vmem:[#allocation10 + $0x70] sm:$0xff]  ;;  %v423_v39 = vld [vmem:[#allocation10 + $0x88] sm:$0xff]  ;;  %v429_v43 = vld [vmem:[#allocation10 + $0xb8] sm:$0xff] }
  0x54   :  { %2152 = vmatpush1.bf16.msra.mxu1 %v3098_v25  ;;  %218 = vmatprep.mubr.f32.mxu0 %v2983_v0  ;;  %v3112_v38 = vpack.c.bf16 %v420_v37, %v416_v36  ;;  %v427_v40 = vld [vmem:[#allocation10 + $0xa8] sm:$0xff]  ;;  %v422_v44 = vld [vmem:[#allocation10 + $0x80] sm:$0xff]  ;;  %v87_v46 = vld [vmem:[#allocation5 + $0x10] sm:$0xff]  ;;  %v3120_v47 = vpack.c.bf16 %v429_v43, %v425_v41 }
  0x55   :  { %331 = vmatprep.mubr.f32.mxu1 %v2983_v0  ;;  %2122 = vmatprep.subr.bf16.mxu0 %v3102_v29  ;;  %v3116_v42 = vpack.c.bf16 %v427_v40, %v423_v39  ;;  %v426_v45 = vld [vmem:[#allocation10 + $0xa0] sm:$0xff]  ;;  %v424_v48 = vld [vmem:[#allocation10 + $0x90] sm:$0xff]  ;;  %v431_v51 = vld [vmem:[#allocation10 + $0xc8] sm:$0xff] }
  0x56   :  { %2017 = vmatmul.mubr.msk.f32.gmra.mrb[2].mxu0 %vm123_vm0, %v86_v33  ;;  %2154 = vmatprep.subr.bf16.mxu1 %v3106_v34  ;;  %v428_v49 = vld [vmem:[#allocation10 + $0xb0] sm:$0xff]  ;;  %v3124_v50 = vpack.c.bf16 %v426_v45, %v422_v44  ;;  %v435_v52 = vld [vmem:[#allocation10 + $0xe8] sm:$0xff]  ;;  %v433_v53 = vld [vmem:[#allocation10 + $0xd8] sm:$0xff] }
  0x57   :  { %2025 = vmatmul.mubr.msk.f32.gmra.mrb[2].mxu1 %vm123_vm0, %v86_v33  ;;  %2124 = vmatpush1.bf16.msra.mxu0 %v3108_v35  ;;  %v3128_v54 = vpack.c.bf16 %v428_v49, %v424_v48  ;;  %v437_v55 = vld [vmem:[#allocation10 + $0xf8] sm:$0xff]  ;;  %v430_v56 = vld [vmem:[#allocation10 + $0xc0] sm:$0xff]  ;;  %v3132_v58 = vpack.c.bf16 %v435_v52, %v431_v51  ;;  %v432_v59 = vld [vmem:[#allocation10 + $0xd0] sm:$0xff] }
  0x58   :  { %2156 = vmatpush1.bf16.msra.mxu1 %v3112_v38  ;;  %224 = vmatprep.mubr.f32.mxu0 %v2983_v0  ;;  %v434_v57 = vld [vmem:[#allocation10 + $0xe0] sm:$0xff]  ;;  %v436_v60 = vld [vmem:[#allocation10 + $0xf0] sm:$0xff]  ;;  %v3136_v61 = vpack.c.bf16 %v437_v55, %v433_v53  ;;  %v439_v62 = vld [vmem:[#allocation10 + $0x108] sm:$0xff] }
  0x59   :  { %337 = vmatprep.mubr.f32.mxu1 %v2983_v0  ;;  %2126 = vmatprep.subr.bf16.mxu0 %v3116_v42  ;;  %v443_v63 = vld [vmem:[#allocation10 + $0x128] sm:$0xff]  ;;  %v88_v1 = vld [vmem:[#allocation5 + $0x18] sm:$0xff]  ;;  %v3140_v2 = vpack.c.bf16 %v434_v57, %v430_v56  ;;  %v3144_v5 = vpack.c.bf16 %v436_v60, %v432_v59  ;;  %v438_v6 = vld [vmem:[#allocation10 + $0x100] sm:$0xff] }
  0x5a   :  { %2018 = vmatmul.mubr.msk.f32.gmra.mrb[4].mxu0 %vm123_vm0, %v87_v46  ;;  %2158 = vmatprep.subr.bf16.mxu1 %v3120_v47  ;;  %v441_v3 = vld [vmem:[#allocation10 + $0x118] sm:$0xff]  ;;  %v442_v7 = vld [vmem:[#allocation10 + $0x120] sm:$0xff]  ;;  %v3148_v8 = vpack.c.bf16 %v443_v63, %v439_v62  ;;  %v440_v9 = vld [vmem:[#allocation10 + $0x110] sm:$0xff] }
  0x5b   :  { %2026 = vmatmul.mubr.msk.f32.gmra.mrb[4].mxu1 %vm123_vm0, %v87_v46  ;;  %2128 = vmatpush1.bf16.msra.mxu0 %v3124_v50  ;;  %v445_v4 = vld [vmem:[#allocation10 + $0x138] sm:$0xff]  ;;  %v444_v10 = vld [vmem:[#allocation10 + $0x130] sm:$0xff]  ;;  %v447_v12 = vld [vmem:[#allocation10 + $0x148] sm:$0xff]  ;;  %v3156_v15 = vpack.c.bf16 %v442_v7, %v438_v6  ;;  %v103_v7 = vlaneseq }
  0x5c   :  { %2160 = vmatpush1.bf16.msra.mxu1 %v3128_v54  ;;  %230 = vmatprep.mubr.f32.mxu0 %v2983_v0  ;;  %v3152_v11 = vpack.c.bf16 %v445_v4, %v441_v3  ;;  %v451_v13 = vld [vmem:[#allocation10 + $0x168] sm:$0xff]  ;;  %v89_v14 = vld [vmem:[#allocation5 + $0x20] sm:$0xff]  ;;  %v449_v16 = vld [vmem:[#allocation10 + $0x158] sm:$0xff]  ;;  %v3160_v19 = vpack.c.bf16 %v444_v10, %v440_v9 }
  0x5d   :  { %343 = vmatprep.mubr.f32.mxu1 %v2983_v0  ;;  %2130 = vmatprep.subr.bf16.mxu0 %v3132_v58  ;;  %v453_v18 = vld [vmem:[#allocation10 + $0x178] sm:$0xff]  ;;  %v446_v20 = vld [vmem:[#allocation10 + $0x140] sm:$0xff]  ;;  %v3164_v24 = vpack.c.bf16 %v451_v13, %v447_v12  ;;  %v448_v26 = vld [vmem:[#allocation10 + $0x150] sm:$0xff]  ;;  %v104_v9 = vshrl.u32 %v103_v7, 7 }
  0x5e   :  { %2019 = vmatmul.mubr.msk.f32.gmra.mrb[6].mxu0 %vm123_vm0, %v88_v1  ;;  %2162 = vmatprep.subr.bf16.mxu1 %v3136_v61  ;;  %v450_v23 = vld [vmem:[#allocation10 + $0x160] sm:$0xff]  ;;  %v452_v27 = vld [vmem:[#allocation10 + $0x170] sm:$0xff]  ;;  %v3168_v28 = vpack.c.bf16 %v453_v18, %v449_v16  ;;  %v455_v30 = vld [vmem:[#allocation10 + $0x188] sm:$0xff] }
  0x5f   :  { %2027 = vmatmul.mubr.msk.f32.gmra.mrb[6].mxu1 %vm123_vm0, %v88_v1  ;;  %2132 = vmatpush1.bf16.msra.mxu0 %v3140_v2  ;;  %v459_v31 = vld [vmem:[#allocation10 + $0x1a8] sm:$0xff]  ;;  %v3172_v33 = vpack.c.bf16 %v450_v23, %v446_v20  ;;  %v457_v36 = vld [vmem:[#allocation10 + $0x198] sm:$0xff]  ;;  %v3176_v39 = vpack.c.bf16 %v452_v27, %v448_v26  ;;  %v454_v40 = vld [vmem:[#allocation10 + $0x180] sm:$0xff]  ;;  %v105_v10 = vsub.s32 0, %v104_v9  ;;  %v109_v13 = vsub.s32 1, %v104_v9 }
  0x60   :  { %2164 = vmatpush1.bf16.msra.mxu1 %v3144_v5  ;;  %236 = vmatprep.mubr.f32.mxu0 %v2983_v0  ;;  %v90_v32 = vld [vmem:[#allocation5 + $0x28] sm:$0xff]  ;;  %v461_v37 = vld [vmem:[#allocation10 + $0x1b8] sm:$0xff]  ;;  %v458_v41 = vld [vmem:[#allocation10 + $0x1a0] sm:$0xff]  ;;  %v3180_v43 = vpack.c.bf16 %v459_v31, %v455_v30  ;;  %v117_v20 = vsub.s32 3, %v104_v9 }
  0x61   :  { %349 = vmatprep.mubr.f32.mxu1 %v2983_v0  ;;  %2134 = vmatprep.subr.bf16.mxu0 %v3148_v8  ;;  %v456_v44 = vld [vmem:[#allocation10 + $0x190] sm:$0xff]  ;;  %v3184_v46 = vpack.c.bf16 %v461_v37, %v457_v36  ;;  %v463_v48 = vld [vmem:[#allocation10 + $0x1c8] sm:$0xff]  ;;  %v3188_v52 = vpack.c.bf16 %v458_v41, %v454_v40  ;;  %v465_v53 = vld [vmem:[#allocation10 + $0x1d8] sm:$0xff]  ;;  %v113_v40 = vsub.s32 2, %v104_v9 }
  0x62   :  { %2020 = vmatmul.mubr.msk.f32.gmra.mrb[8].mxu0 %vm123_vm0, %v89_v14  ;;  %2166 = vmatprep.subr.bf16.mxu1 %v3152_v11  ;;  %v460_v45 = vld [vmem:[#allocation10 + $0x1b0] sm:$0xff]  ;;  %v467_v49 = vld [vmem:[#allocation10 + $0x1e8] sm:$0xff]  ;;  %v469_v55 = vld [vmem:[#allocation10 + $0x1f8] sm:$0xff] }
  0x63   :  { %2028 = vmatmul.mubr.msk.f32.gmra.mrb[8].mxu1 %vm123_vm0, %v89_v14  ;;  %2136 = vmatpush1.bf16.msra.mxu0 %v3156_v15  ;;  %v91_v51 = vld [vmem:[#allocation5 + $0x30] sm:$0xff]  ;;  %v3192_v56 = vpack.c.bf16 %v460_v45, %v456_v44  ;;  %v462_v57 = vld [vmem:[#allocation10 + $0x1c0] sm:$0xff]  ;;  %v3196_v60 = vpack.c.bf16 %v467_v49, %v463_v48  ;;  %v3200_v1 = vpack.c.bf16 %v469_v55, %v465_v53  ;;  %v92_v3 = vld [vmem:[#allocation5 + $0x38] sm:$0xff] }
  0x64   :  { %2168 = vmatpush1.bf16.msra.mxu1 %v3160_v19  ;;  %242 = vmatprep.mubr.f32.mxu0 %v2983_v0  ;;  %v466_v59 = vld [vmem:[#allocation10 + $0x1e0] sm:$0xff]  ;;  %v464_v62 = vld [vmem:[#allocation10 + $0x1d0] sm:$0xff] }
  0x65   :  { %355 = vmatprep.mubr.f32.mxu1 %v2983_v0  ;;  %2138 = vmatprep.subr.bf16.mxu0 %v3164_v24  ;;  %v468_v63 = vld [vmem:[#allocation10 + $0x1f0] sm:$0xff]  ;;  %v3204_v4 = vpack.c.bf16 %v466_v59, %v462_v57  ;;  %v101_v12 = vld [vmem:[%s3550_s4] sm:$0xf] }
  0x66   :  { %2021 = vmatmul.mubr.msk.f32.gmra.mrb[10].mxu0 %vm123_vm0, %v90_v32  ;;  %2170 = vmatprep.subr.bf16.mxu1 %v3168_v28  ;;  %v3208_v6 = vpack.c.bf16 %v468_v63, %v464_v62  ;;  %v3260_v14 = vrot.slane %v101_v12, %v105_v10  ;;  %v3262_v16 = vrot.slane %v101_v12, %v109_v13 }
  0x67   :  { %2029 = vmatmul.mubr.msk.f32.gmra.mrb[10].mxu1 %vm123_vm0, %v90_v32  ;;  %2140 = vmatpush1.bf16.msra.mxu0 %v3172_v33  ;;  %v3266_v37 = vrot.slane %v101_v12, %v117_v20  ;;  %v3269_v44 = vrot.slane %v101_v12, %v113_v40 }
  0x68   :  { %2172 = vmatpush1.bf16.msra.mxu1 %v3176_v39  ;;  %248 = vmatprep.mubr.f32.mxu0 %v2983_v0 }
  0x69   :  { %361 = vmatprep.mubr.f32.mxu1 %v2983_v0  ;;  %2142 = vmatprep.subr.bf16.mxu0 %v3180_v43 }
  0x6a   :  { %2022 = vmatmul.mubr.msk.f32.gmra.mrb[12].mxu0 %vm123_vm0, %v91_v51  ;;  %2174 = vmatprep.subr.bf16.mxu1 %v3184_v46 }
  0x6b   :  { %2030 = vmatmul.mubr.msk.f32.gmra.mrb[12].mxu1 %vm123_vm0, %v91_v51  ;;  %2144 = vmatpush1.bf16.msra.mxu0 %v3188_v52 }
  0x6c   :  { %2176 = vmatpush1.bf16.msra.mxu1 %v3192_v56  ;;  %254 = vmatprep.mubr.f32.mxu0 %v2983_v0 }
  0x6d   :  { %367 = vmatprep.mubr.f32.mxu1 %v2983_v0  ;;  %2146 = vmatprep.subr.bf16.mxu0 %v3196_v60 }
  0x6e   :  { %2023 = vmatmul.mubr.msk.f32.gmra.mrb[14].mxu0 %vm123_vm0, %v92_v3  ;;  %2178 = vmatprep.subr.bf16.mxu1 %v3200_v1 }
  0x6f   :  { %2031 = vmatmul.mubr.msk.f32.gmra.mrb[14].mxu1 %vm123_vm0, %v92_v3  ;;  %2148 = vmatpush1.bf16.msra.mxu0 %v3204_v4 }
  0x70   :  { %2180 = vmatpush1.bf16.msra.mxu1 %v3208_v6  ;;  %539 = vmatprep.mubr.f32.mxu0 %v2983_v0 }
  0x71   :  { %610 = vmatprep.mubr.f32.mxu1 %v2983_v0  ;;  %2182 = vmatprep.subr.bf16.mxu0 %v3091_v17 }
  0x72   :  { %540 = vmatmul.mubr.f32.vlgmr.msra.gmra.mrb[0].mxu0 %v2983_v0  ;;  %2214 = vmatprep.subr.bf16.mxu1 %v3093_v21 }
  0x73   :  { %611 = vmatmul.mubr.f32.vlgmr.msra.gmra.mrb[0].mxu1 %v2983_v0  ;;  %2184 = vmatpush1.bf16.msra.mxu0 %v3095_v22 }
  0x74   :  { %2216 = vmatpush1.bf16.msra.mxu1 %v3098_v25  ;;  %2186 = vmatprep.subr.bf16.mxu0 %v3102_v29 }
  0x75   :  { %2218 = vmatprep.subr.bf16.mxu1 %v3106_v34  ;;  %718 = vmatprep.mubr.f32.mxu0 %v2983_v0 }
  0x76   :  { %789 = vmatprep.mubr.f32.mxu1 %v2983_v0 }
  0x77   :  { %2188 = vmatpush1.bf16.msra.mxu0 %v3108_v35 }
  0x78   :  { %2220 = vmatpush1.bf16.msra.mxu1 %v3112_v38  ;;  %2190 = vmatprep.subr.bf16.mxu0 %v3116_v42 }
  0x79   :  { %2222 = vmatprep.subr.bf16.mxu1 %v3120_v47 }
  0x7b   :  { %2192 = vmatpush1.bf16.msra.mxu0 %v3124_v50 }
  0x7c   :  { %2224 = vmatpush1.bf16.msra.mxu1 %v3128_v54  ;;  %2194 = vmatprep.subr.bf16.mxu0 %v3132_v58 }
  0x7d   :  { %2226 = vmatprep.subr.bf16.mxu1 %v3136_v61 }
  0x7f   :  { %2196 = vmatpush1.bf16.msra.mxu0 %v3140_v2 }
  0x80   :  { %2228 = vmatpush1.bf16.msra.mxu1 %v3144_v5  ;;  %2198 = vmatprep.subr.bf16.mxu0 %v3148_v8 }
  0x81   :  { %2230 = vmatprep.subr.bf16.mxu1 %v3152_v11 }
  0x83   :  { %2200 = vmatpush1.bf16.msra.mxu0 %v3156_v15 }
  0x84   :  { %2232 = vmatpush1.bf16.msra.mxu1 %v3160_v19  ;;  %2202 = vmatprep.subr.bf16.mxu0 %v3164_v24 }
  0x85   :  { %2234 = vmatprep.subr.bf16.mxu1 %v3168_v28 }
  0x87   :  { %2204 = vmatpush1.bf16.msra.mxu0 %v3172_v33 }
  0x88   :  { %2236 = vmatpush1.bf16.msra.mxu1 %v3176_v39  ;;  %2206 = vmatprep.subr.bf16.mxu0 %v3180_v43 }
  0x89   :  { %2238 = vmatprep.subr.bf16.mxu1 %v3184_v46 }
  0x8b   :  { %2208 = vmatpush1.bf16.msra.mxu0 %v3188_v52 }
  0x8c   :  { %2240 = vmatpush1.bf16.msra.mxu1 %v3192_v56  ;;  %2210 = vmatprep.subr.bf16.mxu0 %v3196_v60 }
  0x8d   :  { %2242 = vmatprep.subr.bf16.mxu1 %v3200_v1 }
  0x8f   :  { %2212 = vmatpush1.bf16.msra.mxu0 %v3204_v4 }
  0x90   :  { %2244 = vmatpush1.bf16.msra.mxu1 %v3208_v6  ;;  %2246 = vmatprep.subr.bf16.mxu0 %v3091_v17 }
  0x91   :  { %2278 = vmatprep.subr.bf16.mxu1 %v3093_v21 }
 0x145   :  { %v541_v18 = vpop.f32.mrb[0].mxu0 }
 0x146   :  { %v2653_v23 = vadd.f32 %v541_v18, %v3260_v14  ;;  %v612_v26 = vpop.f32.mrb[0].mxu1  ;;  %v543_v27 = vpop.f32.mrb[1].mxu0 }
 0x147   :  { %v2654_v30 = vadd.f32 %v543_v27, %v3262_v16  ;;  %v614_v31 = vpop.f32.mrb[1].mxu1  ;;  %v2669_v48 = vadd.f32 %v612_v26, %v3269_v44 }
 0x148   :  { %v2032_v32 = vmul.f32 -1.442695, %v2653_v23  ;;  %v2670_v41 = vadd.f32 %v614_v31, %v3266_v37 }
 0x149   :  { %v2033_v36 = vmul.f32 -1.442695, %v2654_v30 }
 0x14a   :  { %2729 = vpow2.f32 %v2032_v32  ;;  %v2034_v45 = vmul.f32 -1.442695, %v2670_v41 }
 0x14b   :  { %2731 = vpow2.f32 %v2033_v36 }
 0x14c   :  { %2733 = vpow2.f32 %v2034_v45 }
 0x14d   :  { %2735 = vtanh.f32 %v2669_v48 }
 0x154   :  { %v2730_v49 = vpop.eup %2729 }
 0x155   :  { %v2732_v51 = vpop.eup %2731  ;;  %v624_v53 = vadd.f32 1.0, %v2730_v49 }
 0x156   :  { %v630_v55 = vadd.f32 1.0, %v2732_v51  ;;  %v2734_v57 = vpop.eup %2733 }
 0x157   :  { %2737 = vrcp.f32 %v624_v53  ;;  %v2736_v59 = vpop.eup %2735  ;;  %v637_v7 = vadd.f32 1.0, %v2734_v57 }
 0x158   :  { %2739 = vrcp.f32 %v630_v55 }
 0x159   :  { %2741 = vrcp.f32 %v637_v7 }
 0x161   :  { %v2738_v62 = vpop.eup %2737 }
 0x162   :  { %v2740_v63 = vpop.eup %2739  ;;  %v642_v3 = vmul.f32 %v2738_v62, %v2736_v59 }
 0x163   :  { %v641_v9 = vmul.f32 0.0, %v2740_v63  ;;  %v2742_v12 = vpop.eup %2741 }
 0x165   :  { %v3272_v10 = vadd.f32 %v642_v3, %v641_v9 }
 0x167   :  { %2743 = vtanh.f32 %v3272_v10 }
 0x171   :  { %v2744_v13 = vpop.eup %2743 }
 0x172   :  { %v645_v18 = vmul.f32 %v2744_v13, %v2742_v12 }
 0x174   :  { %719 = vmatmul.mubr.f32.vlgmr.msra.gmra.mrb[2].mxu0 %v645_v18  ;;  %790 = vmatmul.mubr.f32.vlgmr.msra.gmra.mrb[2].mxu1 %v645_v18 }
 0x175   :  { %2248 = vmatpush1.bf16.msra.mxu0 %v3095_v22  ;;  %2280 = vmatpush1.bf16.msra.mxu1 %v3098_v25 }
 0x176   :  { %2250 = vmatprep.subr.bf16.mxu0 %v3102_v29  ;;  %2282 = vmatprep.subr.bf16.mxu1 %v3106_v34 }
 0x177   :  { %897 = vmatprep.mubr.f32.mxu0 %v2983_v0  ;;  %968 = vmatprep.mubr.f32.mxu1 %v2983_v0 }
 0x179   :  { %2252 = vmatpush1.bf16.msra.mxu0 %v3108_v35  ;;  %2284 = vmatpush1.bf16.msra.mxu1 %v3112_v38 }
 0x17a   :  { %2254 = vmatprep.subr.bf16.mxu0 %v3116_v42  ;;  %2286 = vmatprep.subr.bf16.mxu1 %v3120_v47 }
 0x17d   :  { %2256 = vmatpush1.bf16.msra.mxu0 %v3124_v50  ;;  %2288 = vmatpush1.bf16.msra.mxu1 %v3128_v54 }
 0x17e   :  { %2258 = vmatprep.subr.bf16.mxu0 %v3132_v58  ;;  %2290 = vmatprep.subr.bf16.mxu1 %v3136_v61 }
 0x181   :  { %2260 = vmatpush1.bf16.msra.mxu0 %v3140_v2  ;;  %2292 = vmatpush1.bf16.msra.mxu1 %v3144_v5 }
 0x182   :  { %2262 = vmatprep.subr.bf16.mxu0 %v3148_v8  ;;  %2294 = vmatprep.subr.bf16.mxu1 %v3152_v11 }
 0x185   :  { %2264 = vmatpush1.bf16.msra.mxu0 %v3156_v15  ;;  %2296 = vmatpush1.bf16.msra.mxu1 %v3160_v19 }
 0x186   :  { %2266 = vmatprep.subr.bf16.mxu0 %v3164_v24  ;;  %2298 = vmatprep.subr.bf16.mxu1 %v3168_v28 }
 0x189   :  { %2268 = vmatpush1.bf16.msra.mxu0 %v3172_v33  ;;  %2300 = vmatpush1.bf16.msra.mxu1 %v3176_v39 }
 0x18a   :  { %2270 = vmatprep.subr.bf16.mxu0 %v3180_v43  ;;  %2302 = vmatprep.subr.bf16.mxu1 %v3184_v46 }
 0x18d   :  { %2272 = vmatpush1.bf16.msra.mxu0 %v3188_v52  ;;  %2304 = vmatpush1.bf16.msra.mxu1 %v3192_v56 }
 0x18e   :  { %2274 = vmatprep.subr.bf16.mxu0 %v3196_v60  ;;  %2306 = vmatprep.subr.bf16.mxu1 %v3200_v1 }
 0x191   :  { %2276 = vmatpush1.bf16.msra.mxu0 %v3204_v4  ;;  %2308 = vmatpush1.bf16.msra.mxu1 %v3208_v6 }
 0x192   :  { %2310 = vmatprep.subr.bf16.mxu0 %v3091_v17  ;;  %2342 = vmatprep.subr.bf16.mxu1 %v3093_v21 }
 0x247   :  { %v720_v20 = vpop.f32.mrb[2].mxu0  ;;  %v791_v23 = vpop.f32.mrb[2].mxu1 }
 0x248   :  { %v2655_v26 = vadd.f32 %v720_v20, %v3260_v14  ;;  %v722_v27 = vpop.f32.mrb[3].mxu0  ;;  %v793_v30 = vpop.f32.mrb[3].mxu1  ;;  %v2671_v45 = vadd.f32 %v791_v23, %v3269_v44 }
 0x249   :  { %v2656_v31 = vadd.f32 %v722_v27, %v3262_v16  ;;  %v2672_v40 = vadd.f32 %v793_v30, %v3266_v37 }
 0x24a   :  { %v2035_v32 = vmul.f32 -1.442695, %v2655_v26 }
 0x24b   :  { %v2036_v36 = vmul.f32 -1.442695, %v2656_v31  ;;  %v2037_v41 = vmul.f32 -1.442695, %v2672_v40 }
 0x24c   :  { %2745 = vpow2.f32 %v2035_v32 }
 0x24d   :  { %2747 = vpow2.f32 %v2036_v36 }
 0x24e   :  { %2749 = vpow2.f32 %v2037_v41 }
 0x24f   :  { %2751 = vtanh.f32 %v2671_v45 }
 0x256   :  { %v2746_v48 = vpop.eup %2745 }
 0x257   :  { %v2748_v49 = vpop.eup %2747  ;;  %v803_v51 = vadd.f32 1.0, %v2746_v48 }
 0x258   :  { %v809_v53 = vadd.f32 1.0, %v2748_v49  ;;  %v2750_v55 = vpop.eup %2749 }
 0x259   :  { %2753 = vrcp.f32 %v803_v51  ;;  %v2752_v57 = vpop.eup %2751  ;;  %v816_v3 = vadd.f32 1.0, %v2750_v55 }
 0x25a   :  { %2755 = vrcp.f32 %v809_v53 }
 0x25b   :  { %2757 = vrcp.f32 %v816_v3 }
 0x263   :  { %v2754_v59 = vpop.eup %2753 }
 0x264   :  { %v2756_v62 = vpop.eup %2755  ;;  %v821_v63 = vmul.f32 %v2754_v59, %v2752_v57 }
 0x265   :  { %v820_v7 = vmul.f32 %v2756_v62, %v3272_v10  ;;  %v2758_v12 = vpop.eup %2757 }
 0x267   :  { %v3314_v9 = vadd.f32 %v821_v63, %v820_v7 }
 0x269   :  { %2759 = vtanh.f32 %v3314_v9 }
 0x273   :  { %v2760_v13 = vpop.eup %2759 }
 0x274   :  { %v824_v18 = vmul.f32 %v2760_v13, %v2758_v12 }
 0x276   :  { %898 = vmatmul.mubr.f32.vlgmr.msra.gmra.mrb[4].mxu0 %v824_v18  ;;  %969 = vmatmul.mubr.f32.vlgmr.msra.gmra.mrb[4].mxu1 %v824_v18 }
 0x277   :  { %2312 = vmatpush1.bf16.msra.mxu0 %v3095_v22  ;;  %2344 = vmatpush1.bf16.msra.mxu1 %v3098_v25 }
 0x278   :  { %2314 = vmatprep.subr.bf16.mxu0 %v3102_v29  ;;  %2346 = vmatprep.subr.bf16.mxu1 %v3106_v34 }
 0x279   :  { %1076 = vmatprep.mubr.f32.mxu0 %v2983_v0  ;;  %1147 = vmatprep.mubr.f32.mxu1 %v2983_v0 }
 0x27b   :  { %2316 = vmatpush1.bf16.msra.mxu0 %v3108_v35  ;;  %2348 = vmatpush1.bf16.msra.mxu1 %v3112_v38 }
 0x27c   :  { %2318 = vmatprep.subr.bf16.mxu0 %v3116_v42  ;;  %2350 = vmatprep.subr.bf16.mxu1 %v3120_v47 }
 0x27f   :  { %2320 = vmatpush1.bf16.msra.mxu0 %v3124_v50  ;;  %2352 = vmatpush1.bf16.msra.mxu1 %v3128_v54 }
 0x280   :  { %2322 = vmatprep.subr.bf16.mxu0 %v3132_v58  ;;  %2354 = vmatprep.subr.bf16.mxu1 %v3136_v61 }
 0x283   :  { %2324 = vmatpush1.bf16.msra.mxu0 %v3140_v2  ;;  %2356 = vmatpush1.bf16.msra.mxu1 %v3144_v5 }
 0x284   :  { %2326 = vmatprep.subr.bf16.mxu0 %v3148_v8  ;;  %2358 = vmatprep.subr.bf16.mxu1 %v3152_v11 }
 0x287   :  { %2328 = vmatpush1.bf16.msra.mxu0 %v3156_v15  ;;  %2360 = vmatpush1.bf16.msra.mxu1 %v3160_v19 }
 0x288   :  { %2330 = vmatprep.subr.bf16.mxu0 %v3164_v24  ;;  %2362 = vmatprep.subr.bf16.mxu1 %v3168_v28 }
 0x28b   :  { %2332 = vmatpush1.bf16.msra.mxu0 %v3172_v33  ;;  %2364 = vmatpush1.bf16.msra.mxu1 %v3176_v39 }
 0x28c   :  { %2334 = vmatprep.subr.bf16.mxu0 %v3180_v43  ;;  %2366 = vmatprep.subr.bf16.mxu1 %v3184_v46 }
 0x28f   :  { %2336 = vmatpush1.bf16.msra.mxu0 %v3188_v52  ;;  %2368 = vmatpush1.bf16.msra.mxu1 %v3192_v56 }
 0x290   :  { %2338 = vmatprep.subr.bf16.mxu0 %v3196_v60  ;;  %2370 = vmatprep.subr.bf16.mxu1 %v3200_v1 }
 0x293   :  { %2340 = vmatpush1.bf16.msra.mxu0 %v3204_v4  ;;  %2372 = vmatpush1.bf16.msra.mxu1 %v3208_v6 }
 0x294   :  { %2374 = vmatprep.subr.bf16.mxu0 %v3091_v17  ;;  %2406 = vmatprep.subr.bf16.mxu1 %v3093_v21 }
 0x349   :  { %v899_v10 = vpop.f32.mrb[4].mxu0  ;;  %v970_v20 = vpop.f32.mrb[4].mxu1 }
 0x34a   :  { %v2657_v23 = vadd.f32 %v899_v10, %v3260_v14  ;;  %v901_v26 = vpop.f32.mrb[5].mxu0  ;;  %v972_v27 = vpop.f32.mrb[5].mxu1  ;;  %v2673_v41 = vadd.f32 %v970_v20, %v3269_v44 }
 0x34b   :  { %v2658_v30 = vadd.f32 %v901_v26, %v3262_v16  ;;  %v2674_v36 = vadd.f32 %v972_v27, %v3266_v37 }
 0x34c   :  { %v2038_v31 = vmul.f32 -1.442695, %v2657_v23 }
 0x34d   :  { %v2039_v32 = vmul.f32 -1.442695, %v2658_v30  ;;  %v2040_v40 = vmul.f32 -1.442695, %v2674_v36 }
 0x34e   :  { %2761 = vpow2.f32 %v2038_v31 }
 0x34f   :  { %2763 = vpow2.f32 %v2039_v32 }
 0x350   :  { %2765 = vpow2.f32 %v2040_v40 }
 0x351   :  { %2767 = vtanh.f32 %v2673_v41 }
 0x358   :  { %v2762_v45 = vpop.eup %2761 }
 0x359   :  { %v2764_v48 = vpop.eup %2763  ;;  %v982_v49 = vadd.f32 1.0, %v2762_v45 }
 0x35a   :  { %v988_v51 = vadd.f32 1.0, %v2764_v48  ;;  %v2766_v53 = vpop.eup %2765 }
 0x35b   :  { %2769 = vrcp.f32 %v982_v49  ;;  %v2768_v55 = vpop.eup %2767  ;;  %v995_v63 = vadd.f32 1.0, %v2766_v53 }
 0x35c   :  { %2771 = vrcp.f32 %v988_v51 }
 0x35d   :  { %2773 = vrcp.f32 %v995_v63 }
 0x365   :  { %v2770_v57 = vpop.eup %2769 }
 0x366   :  { %v2772_v59 = vpop.eup %2771  ;;  %v1000_v62 = vmul.f32 %v2770_v57, %v2768_v55 }
 0x367   :  { %v999_v3 = vmul.f32 %v2772_v59, %v3314_v9  ;;  %v2774_v12 = vpop.eup %2773 }
 0x369   :  { %v3356_v7 = vadd.f32 %v1000_v62, %v999_v3 }
 0x36b   :  { %2775 = vtanh.f32 %v3356_v7 }
 0x375   :  { %v2776_v13 = vpop.eup %2775 }
 0x376   :  { %v1003_v18 = vmul.f32 %v2776_v13, %v2774_v12 }
 0x378   :  { %1077 = vmatmul.mubr.f32.vlgmr.msra.gmra.mrb[6].mxu0 %v1003_v18  ;;  %1148 = vmatmul.mubr.f32.vlgmr.msra.gmra.mrb[6].mxu1 %v1003_v18 }
 0x379   :  { %2376 = vmatpush1.bf16.msra.mxu0 %v3095_v22  ;;  %2408 = vmatpush1.bf16.msra.mxu1 %v3098_v25 }
 0x37a   :  { %2378 = vmatprep.subr.bf16.mxu0 %v3102_v29  ;;  %2410 = vmatprep.subr.bf16.mxu1 %v3106_v34 }
 0x37b   :  { %1255 = vmatprep.mubr.f32.mxu0 %v2983_v0  ;;  %1326 = vmatprep.mubr.f32.mxu1 %v2983_v0 }
 0x37d   :  { %2380 = vmatpush1.bf16.msra.mxu0 %v3108_v35  ;;  %2412 = vmatpush1.bf16.msra.mxu1 %v3112_v38 }
 0x37e   :  { %2382 = vmatprep.subr.bf16.mxu0 %v3116_v42  ;;  %2414 = vmatprep.subr.bf16.mxu1 %v3120_v47 }
 0x381   :  { %2384 = vmatpush1.bf16.msra.mxu0 %v3124_v50  ;;  %2416 = vmatpush1.bf16.msra.mxu1 %v3128_v54 }
 0x382   :  { %2386 = vmatprep.subr.bf16.mxu0 %v3132_v58  ;;  %2418 = vmatprep.subr.bf16.mxu1 %v3136_v61 }
 0x385   :  { %2388 = vmatpush1.bf16.msra.mxu0 %v3140_v2  ;;  %2420 = vmatpush1.bf16.msra.mxu1 %v3144_v5 }
 0x386   :  { %2390 = vmatprep.subr.bf16.mxu0 %v3148_v8  ;;  %2422 = vmatprep.subr.bf16.mxu1 %v3152_v11 }
 0x389   :  { %2392 = vmatpush1.bf16.msra.mxu0 %v3156_v15  ;;  %2424 = vmatpush1.bf16.msra.mxu1 %v3160_v19 }
 0x38a   :  { %2394 = vmatprep.subr.bf16.mxu0 %v3164_v24  ;;  %2426 = vmatprep.subr.bf16.mxu1 %v3168_v28 }
 0x38d   :  { %2396 = vmatpush1.bf16.msra.mxu0 %v3172_v33  ;;  %2428 = vmatpush1.bf16.msra.mxu1 %v3176_v39 }
 0x38e   :  { %2398 = vmatprep.subr.bf16.mxu0 %v3180_v43  ;;  %2430 = vmatprep.subr.bf16.mxu1 %v3184_v46 }
 0x391   :  { %2400 = vmatpush1.bf16.msra.mxu0 %v3188_v52  ;;  %2432 = vmatpush1.bf16.msra.mxu1 %v3192_v56 }
 0x392   :  { %2402 = vmatprep.subr.bf16.mxu0 %v3196_v60  ;;  %2434 = vmatprep.subr.bf16.mxu1 %v3200_v1 }
 0x395   :  { %2404 = vmatpush1.bf16.msra.mxu0 %v3204_v4  ;;  %2436 = vmatpush1.bf16.msra.mxu1 %v3208_v6 }
 0x396   :  { %2438 = vmatprep.subr.bf16.mxu0 %v3091_v17  ;;  %2470 = vmatprep.subr.bf16.mxu1 %v3093_v21 }
 0x44b   :  { %v1078_v9 = vpop.f32.mrb[6].mxu0  ;;  %v1149_v10 = vpop.f32.mrb[6].mxu1 }
 0x44c   :  { %v2659_v20 = vadd.f32 %v1078_v9, %v3260_v14  ;;  %v1080_v23 = vpop.f32.mrb[7].mxu0  ;;  %v1151_v26 = vpop.f32.mrb[7].mxu1  ;;  %v2675_v40 = vadd.f32 %v1149_v10, %v3269_v44 }
 0x44d   :  { %v2660_v27 = vadd.f32 %v1080_v23, %v3262_v16  ;;  %v2676_v32 = vadd.f32 %v1151_v26, %v3266_v37 }
 0x44e   :  { %v2041_v30 = vmul.f32 -1.442695, %v2659_v20 }
 0x44f   :  { %v2042_v31 = vmul.f32 -1.442695, %v2660_v27  ;;  %v2043_v36 = vmul.f32 -1.442695, %v2676_v32 }
 0x450   :  { %2777 = vpow2.f32 %v2041_v30 }
 0x451   :  { %2779 = vpow2.f32 %v2042_v31 }
 0x452   :  { %2781 = vpow2.f32 %v2043_v36 }
 0x453   :  { %2783 = vtanh.f32 %v2675_v40 }
 0x45a   :  { %v2778_v41 = vpop.eup %2777 }
 0x45b   :  { %v2780_v45 = vpop.eup %2779  ;;  %v1161_v48 = vadd.f32 1.0, %v2778_v41 }
 0x45c   :  { %v1167_v49 = vadd.f32 1.0, %v2780_v45  ;;  %v2782_v51 = vpop.eup %2781 }
 0x45d   :  { %2785 = vrcp.f32 %v1161_v48  ;;  %v2784_v53 = vpop.eup %2783  ;;  %v1174_v62 = vadd.f32 1.0, %v2782_v51 }
 0x45e   :  { %2787 = vrcp.f32 %v1167_v49 }
 0x45f   :  { %2789 = vrcp.f32 %v1174_v62 }
 0x467   :  { %v2786_v55 = vpop.eup %2785 }
 0x468   :  { %v2788_v57 = vpop.eup %2787  ;;  %v1179_v59 = vmul.f32 %v2786_v55, %v2784_v53 }
 0x469   :  { %v1178_v63 = vmul.f32 %v2788_v57, %v3356_v7  ;;  %v2790_v12 = vpop.eup %2789 }
 0x46b   :  { %v3398_v3 = vadd.f32 %v1179_v59, %v1178_v63 }
 0x46d   :  { %2791 = vtanh.f32 %v3398_v3 }
 0x477   :  { %v2792_v13 = vpop.eup %2791 }
 0x478   :  { %v1182_v18 = vmul.f32 %v2792_v13, %v2790_v12 }
 0x47a   :  { %1256 = vmatmul.mubr.f32.vlgmr.msra.gmra.mrb[8].mxu0 %v1182_v18  ;;  %1327 = vmatmul.mubr.f32.vlgmr.msra.gmra.mrb[8].mxu1 %v1182_v18 }
 0x47b   :  { %2440 = vmatpush1.bf16.msra.mxu0 %v3095_v22  ;;  %2472 = vmatpush1.bf16.msra.mxu1 %v3098_v25 }
 0x47c   :  { %2442 = vmatprep.subr.bf16.mxu0 %v3102_v29  ;;  %2474 = vmatprep.subr.bf16.mxu1 %v3106_v34 }
 0x47d   :  { %1434 = vmatprep.mubr.f32.mxu0 %v2983_v0  ;;  %1505 = vmatprep.mubr.f32.mxu1 %v2983_v0 }
 0x47f   :  { %2444 = vmatpush1.bf16.msra.mxu0 %v3108_v35  ;;  %2476 = vmatpush1.bf16.msra.mxu1 %v3112_v38 }
 0x480   :  { %2446 = vmatprep.subr.bf16.mxu0 %v3116_v42  ;;  %2478 = vmatprep.subr.bf16.mxu1 %v3120_v47 }
 0x483   :  { %2448 = vmatpush1.bf16.msra.mxu0 %v3124_v50  ;;  %2480 = vmatpush1.bf16.msra.mxu1 %v3128_v54 }
 0x484   :  { %2450 = vmatprep.subr.bf16.mxu0 %v3132_v58  ;;  %2482 = vmatprep.subr.bf16.mxu1 %v3136_v61 }
 0x487   :  { %2452 = vmatpush1.bf16.msra.mxu0 %v3140_v2  ;;  %2484 = vmatpush1.bf16.msra.mxu1 %v3144_v5 }
 0x488   :  { %2454 = vmatprep.subr.bf16.mxu0 %v3148_v8  ;;  %2486 = vmatprep.subr.bf16.mxu1 %v3152_v11 }
 0x48b   :  { %2456 = vmatpush1.bf16.msra.mxu0 %v3156_v15  ;;  %2488 = vmatpush1.bf16.msra.mxu1 %v3160_v19 }
 0x48c   :  { %2458 = vmatprep.subr.bf16.mxu0 %v3164_v24  ;;  %2490 = vmatprep.subr.bf16.mxu1 %v3168_v28 }
 0x48f   :  { %2460 = vmatpush1.bf16.msra.mxu0 %v3172_v33  ;;  %2492 = vmatpush1.bf16.msra.mxu1 %v3176_v39 }
 0x490   :  { %2462 = vmatprep.subr.bf16.mxu0 %v3180_v43  ;;  %2494 = vmatprep.subr.bf16.mxu1 %v3184_v46 }
 0x493   :  { %2464 = vmatpush1.bf16.msra.mxu0 %v3188_v52  ;;  %2496 = vmatpush1.bf16.msra.mxu1 %v3192_v56 }
 0x494   :  { %2466 = vmatprep.subr.bf16.mxu0 %v3196_v60  ;;  %2498 = vmatprep.subr.bf16.mxu1 %v3200_v1 }
 0x497   :  { %2468 = vmatpush1.bf16.msra.mxu0 %v3204_v4  ;;  %2500 = vmatpush1.bf16.msra.mxu1 %v3208_v6 }
 0x498   :  { %2502 = vmatprep.subr.bf16.mxu0 %v3091_v17  ;;  %2534 = vmatprep.subr.bf16.mxu1 %v3093_v21 }
 0x54d   :  { %v1257_v7 = vpop.f32.mrb[8].mxu0  ;;  %v1328_v9 = vpop.f32.mrb[8].mxu1 }
 0x54e   :  { %v2661_v10 = vadd.f32 %v1257_v7, %v3260_v14  ;;  %v1259_v20 = vpop.f32.mrb[9].mxu0  ;;  %v1330_v23 = vpop.f32.mrb[9].mxu1  ;;  %v2677_v36 = vadd.f32 %v1328_v9, %v3269_v44 }
 0x54f   :  { %v2662_v26 = vadd.f32 %v1259_v20, %v3262_v16  ;;  %v2678_v31 = vadd.f32 %v1330_v23, %v3266_v37 }
 0x550   :  { %v2044_v27 = vmul.f32 -1.442695, %v2661_v10 }
 0x551   :  { %v2045_v30 = vmul.f32 -1.442695, %v2662_v26  ;;  %v2046_v32 = vmul.f32 -1.442695, %v2678_v31 }
 0x552   :  { %2793 = vpow2.f32 %v2044_v27 }
 0x553   :  { %2795 = vpow2.f32 %v2045_v30 }
 0x554   :  { %2797 = vpow2.f32 %v2046_v32 }
 0x555   :  { %2799 = vtanh.f32 %v2677_v36 }
 0x55c   :  { %v2794_v40 = vpop.eup %2793 }
 0x55d   :  { %v2796_v41 = vpop.eup %2795  ;;  %v1340_v45 = vadd.f32 1.0, %v2794_v40 }
 0x55e   :  { %v1346_v48 = vadd.f32 1.0, %v2796_v41  ;;  %v2798_v49 = vpop.eup %2797 }
 0x55f   :  { %2801 = vrcp.f32 %v1340_v45  ;;  %v2800_v51 = vpop.eup %2799  ;;  %v1353_v59 = vadd.f32 1.0, %v2798_v49 }
 0x560   :  { %2803 = vrcp.f32 %v1346_v48 }
 0x561   :  { %2805 = vrcp.f32 %v1353_v59 }
 0x569   :  { %v2802_v53 = vpop.eup %2801 }
 0x56a   :  { %v2804_v55 = vpop.eup %2803  ;;  %v1358_v57 = vmul.f32 %v2802_v53, %v2800_v51 }
 0x56b   :  { %v1357_v62 = vmul.f32 %v2804_v55, %v3398_v3  ;;  %v2806_v12 = vpop.eup %2805 }
 0x56d   :  { %v3440_v63 = vadd.f32 %v1358_v57, %v1357_v62 }
 0x56f   :  { %2807 = vtanh.f32 %v3440_v63 }
 0x579   :  { %v2808_v13 = vpop.eup %2807 }
 0x57a   :  { %v1361_v18 = vmul.f32 %v2808_v13, %v2806_v12  ;;  %v1908_v13 = vld [vmem:[#allocation11 + $0x18] sm:$0xff] }
 0x57c   :  { %1435 = vmatmul.mubr.f32.vlgmr.msra.gmra.mrb[10].mxu0 %v1361_v18  ;;  %1506 = vmatmul.mubr.f32.vlgmr.msra.gmra.mrb[10].mxu1 %v1361_v18 }
 0x57d   :  { %2504 = vmatpush1.bf16.msra.mxu0 %v3095_v22  ;;  %2536 = vmatpush1.bf16.msra.mxu1 %v3098_v25 }
 0x57e   :  { %2506 = vmatprep.subr.bf16.mxu0 %v3102_v29  ;;  %2538 = vmatprep.subr.bf16.mxu1 %v3106_v34 }
 0x57f   :  { %1613 = vmatprep.mubr.f32.mxu0 %v2983_v0  ;;  %1684 = vmatprep.mubr.f32.mxu1 %v2983_v0 }
 0x581   :  { %2508 = vmatpush1.bf16.msra.mxu0 %v3108_v35  ;;  %2540 = vmatpush1.bf16.msra.mxu1 %v3112_v38 }
 0x582   :  { %2510 = vmatprep.subr.bf16.mxu0 %v3116_v42  ;;  %2542 = vmatprep.subr.bf16.mxu1 %v3120_v47 }
 0x585   :  { %2512 = vmatpush1.bf16.msra.mxu0 %v3124_v50  ;;  %2544 = vmatpush1.bf16.msra.mxu1 %v3128_v54 }
 0x586   :  { %2514 = vmatprep.subr.bf16.mxu0 %v3132_v58  ;;  %2546 = vmatprep.subr.bf16.mxu1 %v3136_v61 }
 0x589   :  { %2516 = vmatpush1.bf16.msra.mxu0 %v3140_v2  ;;  %2548 = vmatpush1.bf16.msra.mxu1 %v3144_v5 }
 0x58a   :  { %2518 = vmatprep.subr.bf16.mxu0 %v3148_v8  ;;  %2550 = vmatprep.subr.bf16.mxu1 %v3152_v11 }
 0x58d   :  { %2520 = vmatpush1.bf16.msra.mxu0 %v3156_v15  ;;  %2552 = vmatpush1.bf16.msra.mxu1 %v3160_v19 }
 0x58e   :  { %2522 = vmatprep.subr.bf16.mxu0 %v3164_v24  ;;  %2554 = vmatprep.subr.bf16.mxu1 %v3168_v28 }
 0x591   :  { %2524 = vmatpush1.bf16.msra.mxu0 %v3172_v33  ;;  %2556 = vmatpush1.bf16.msra.mxu1 %v3176_v39 }
 0x592   :  { %2526 = vmatprep.subr.bf16.mxu0 %v3180_v43  ;;  %2558 = vmatprep.subr.bf16.mxu1 %v3184_v46 }
 0x595   :  { %2528 = vmatpush1.bf16.msra.mxu0 %v3188_v52  ;;  %2560 = vmatpush1.bf16.msra.mxu1 %v3192_v56 }
 0x596   :  { %2530 = vmatprep.subr.bf16.mxu0 %v3196_v60  ;;  %2562 = vmatprep.subr.bf16.mxu1 %v3200_v1 }
 0x599   :  { %2532 = vmatpush1.bf16.msra.mxu0 %v3204_v4  ;;  %2564 = vmatpush1.bf16.msra.mxu1 %v3208_v6 }
 0x59a   :  { %2566 = vmatprep.subr.bf16.mxu0 %v3091_v17  ;;  %2598 = vmatprep.subr.bf16.mxu1 %v3093_v21 }
 0x64f   :  { %v1436_v3 = vpop.f32.mrb[10].mxu0  ;;  %v1507_v7 = vpop.f32.mrb[10].mxu1 }
 0x650   :  { %v2663_v9 = vadd.f32 %v1436_v3, %v3260_v14  ;;  %v1438_v10 = vpop.f32.mrb[11].mxu0  ;;  %v1509_v20 = vpop.f32.mrb[11].mxu1  ;;  %v2679_v32 = vadd.f32 %v1507_v7, %v3269_v44  ;;  %v1909_v3 = vld [vmem:[#allocation11 + $0x20] sm:$0xff]  ;;  %v1910_v7 = vld [vmem:[#allocation11 + $0x28] sm:$0xff] }
 0x651   :  { %v2664_v23 = vadd.f32 %v1438_v10, %v3262_v16  ;;  %v2680_v30 = vadd.f32 %v1509_v20, %v3266_v37  ;;  %v1911_v10 = vld [vmem:[#allocation11 + $0x30] sm:$0xff]  ;;  %v1912_v20 = vld [vmem:[#allocation11 + $0x38] sm:$0xff] }
 0x652   :  { %v2047_v26 = vmul.f32 -1.442695, %v2663_v9  ;;  %v2636_v9 = vpack.c.bf16 %v1910_v7, %v1909_v3 }
 0x653   :  { %v2048_v27 = vmul.f32 -1.442695, %v2664_v23  ;;  %v2049_v31 = vmul.f32 -1.442695, %v2680_v30  ;;  %v2639_v23 = vpack.c.bf16 %v1912_v20, %v1911_v10 }
 0x654   :  { %2809 = vpow2.f32 %v2047_v26  ;;  %v1913_v26 = vld [vmem:[#allocation11 + $0x40] sm:$0xff] }
 0x655   :  { %2811 = vpow2.f32 %v2048_v27  ;;  %v1914_v27 = vld [vmem:[#allocation11 + $0x48] sm:$0xff] }
 0x656   :  { %2813 = vpow2.f32 %v2049_v31  ;;  %v2642_v30 = vpack.c.bf16 %v1914_v27, %v1913_v26  ;;  %v1915_v31 = vld [vmem:[#allocation11 + $0x50] sm:$0xff] }
 0x657   :  { %2815 = vtanh.f32 %v2679_v32  ;;  %v1916_v32 = vld [vmem:[#allocation11 + $0x58] sm:$0xff] }
 0x65e   :  { %v2810_v17 = vpop.eup %2809 }
 0x65f   :  { %v2812_v36 = vpop.eup %2811  ;;  %v1519_v21 = vadd.f32 1.0, %v2810_v17  ;;  %v1917_v17 = vld [vmem:[#allocation11 + $0x60] sm:$0xff] }
 0x660   :  { %v1525_v40 = vadd.f32 1.0, %v2812_v36  ;;  %v2814_v41 = vpop.eup %2813  ;;  %v2645_v36 = vpack.c.bf16 %v1916_v32, %v1915_v31 }
 0x661   :  { %2817 = vrcp.f32 %v1519_v21  ;;  %v2816_v45 = vpop.eup %2815  ;;  %v1532_v53 = vadd.f32 1.0, %v2814_v41  ;;  %v1918_v21 = vld [vmem:[#allocation11 + $0x68] sm:$0xff]  ;;  %v1919_v41 = vld [vmem:[#allocation11 + $0x70] sm:$0xff] }
 0x662   :  { %2819 = vrcp.f32 %v1525_v40  ;;  %v2648_v40 = vpack.c.bf16 %v1918_v21, %v1917_v17 }
 0x663   :  { %2821 = vrcp.f32 %v1532_v53 }
 0x66b   :  { %v2818_v48 = vpop.eup %2817 }
 0x66c   :  { %v2820_v49 = vpop.eup %2819  ;;  %v1537_v51 = vmul.f32 %v2818_v48, %v2816_v45  ;;  %v1920_v45 = vld [vmem:[#allocation11 + $0x78] sm:$0xff] }
 0x66d   :  { %v1536_v55 = vmul.f32 %v2820_v49, %v3440_v63  ;;  %v2822_v59 = vpop.eup %2821  ;;  %v1907_v63 = vld [vmem:[#allocation11 + $0x10] sm:$0xff]  ;;  %v2651_v48 = vpack.c.bf16 %v1920_v45, %v1919_v41 }
 0x66e   :  { %v2633_v18 = vpack.c.bf16 %v1908_v13, %v1907_v63 }
 0x66f   :  { %v3482_v57 = vadd.f32 %v1537_v51, %v1536_v55 }
 0x671   :  { %2823 = vtanh.f32 %v3482_v57 }
 0x67b   :  { %v2824_v62 = vpop.eup %2823 }
 0x67c   :  { %v1540_v12 = vmul.f32 %v2824_v62, %v2822_v59 }
 0x67e   :  { %1614 = vmatmul.mubr.f32.vlgmr.msra.gmra.mrb[12].mxu0 %v1540_v12  ;;  %1685 = vmatmul.mubr.f32.vlgmr.msra.gmra.mrb[12].mxu1 %v1540_v12 }
 0x67f   :  { %2568 = vmatpush1.bf16.msra.mxu0 %v3095_v22  ;;  %2600 = vmatpush1.bf16.msra.mxu1 %v3098_v25 }
 0x680   :  { %2570 = vmatprep.subr.bf16.mxu0 %v3102_v29  ;;  %2602 = vmatprep.subr.bf16.mxu1 %v3106_v34 }
 0x681   :  { %1792 = vmatprep.mubr.f32.mxu0 %v2983_v0  ;;  %1863 = vmatprep.mubr.f32.mxu1 %v2983_v0 }
 0x683   :  { %2572 = vmatpush1.bf16.msra.mxu0 %v3108_v35  ;;  %2604 = vmatpush1.bf16.msra.mxu1 %v3112_v38 }
 0x684   :  { %2574 = vmatprep.subr.bf16.mxu0 %v3116_v42  ;;  %2606 = vmatprep.subr.bf16.mxu1 %v3120_v47 }
 0x687   :  { %2576 = vmatpush1.bf16.msra.mxu0 %v3124_v50  ;;  %2608 = vmatpush1.bf16.msra.mxu1 %v3128_v54 }
 0x688   :  { %2578 = vmatprep.subr.bf16.mxu0 %v3132_v58  ;;  %2610 = vmatprep.subr.bf16.mxu1 %v3136_v61 }
 0x68b   :  { %2580 = vmatpush1.bf16.msra.mxu0 %v3140_v2  ;;  %2612 = vmatpush1.bf16.msra.mxu1 %v3144_v5 }
 0x68c   :  { %2582 = vmatprep.subr.bf16.mxu0 %v3148_v8  ;;  %2614 = vmatprep.subr.bf16.mxu1 %v3152_v11 }
 0x68f   :  { %2584 = vmatpush1.bf16.msra.mxu0 %v3156_v15  ;;  %2616 = vmatpush1.bf16.msra.mxu1 %v3160_v19 }
 0x690   :  { %2586 = vmatprep.subr.bf16.mxu0 %v3164_v24  ;;  %2618 = vmatprep.subr.bf16.mxu1 %v3168_v28 }
 0x693   :  { %2588 = vmatpush1.bf16.msra.mxu0 %v3172_v33  ;;  %2620 = vmatpush1.bf16.msra.mxu1 %v3176_v39 }
 0x694   :  { %2590 = vmatprep.subr.bf16.mxu0 %v3180_v43  ;;  %2622 = vmatprep.subr.bf16.mxu1 %v3184_v46 }
 0x697   :  { %2592 = vmatpush1.bf16.msra.mxu0 %v3188_v52  ;;  %2624 = vmatpush1.bf16.msra.mxu1 %v3192_v56 }
 0x698   :  { %2594 = vmatprep.subr.bf16.mxu0 %v3196_v60  ;;  %2626 = vmatprep.subr.bf16.mxu1 %v3200_v1  ;;  %v1905_v60 = vld [vmem:[#allocation11] sm:$0xff]  ;;  %v1906_v1 = vld [vmem:[#allocation11 + $0x8] sm:$0xff] }
 0x69b   :  { %2596 = vmatpush1.bf16.msra.mxu0 %v3204_v4  ;;  %2628 = vmatpush1.bf16.msra.mxu1 %v3208_v6  ;;  %v2630_v4 = vpack.c.bf16 %v1906_v1, %v1905_v60  ;;  %v2984_v6 = vmov 0.0|0.0  }
 0x69c   :  { %2629 = vmatprep.subr.bf16.mxu0 %v2984_v6 }
 0x751   :  { %v1615_v22 = vpop.f32.mrb[12].mxu0  ;;  %v1686_v25 = vpop.f32.mrb[12].mxu1 }
 0x752   :  { %v2665_v29 = vadd.f32 %v1615_v22, %v3260_v14  ;;  %v1617_v34 = vpop.f32.mrb[13].mxu0  ;;  %v1688_v35 = vpop.f32.mrb[13].mxu1  ;;  %v2681_v58 = vadd.f32 %v1686_v25, %v3269_v44 }
 0x753   :  { %v2666_v38 = vadd.f32 %v1617_v34, %v3262_v16  ;;  %v2682_v50 = vadd.f32 %v1688_v35, %v3266_v37 }
 0x754   :  { %v2050_v42 = vmul.f32 -1.442695, %v2665_v29 }
 0x755   :  { %v2051_v47 = vmul.f32 -1.442695, %v2666_v38  ;;  %v2052_v54 = vmul.f32 -1.442695, %v2682_v50 }
 0x756   :  { %2825 = vpow2.f32 %v2050_v42 }
 0x757   :  { %2827 = vpow2.f32 %v2051_v47 }
 0x758   :  { %2829 = vpow2.f32 %v2052_v54 }
 0x759   :  { %2831 = vtanh.f32 %v2681_v58 }
 0x760   :  { %v2826_v61 = vpop.eup %2825 }
 0x761   :  { %v2828_v2 = vpop.eup %2827  ;;  %v1698_v5 = vadd.f32 1.0, %v2826_v61 }
 0x762   :  { %v1704_v8 = vadd.f32 1.0, %v2828_v2  ;;  %v2830_v11 = vpop.eup %2829 }
 0x763   :  { %2833 = vrcp.f32 %v1698_v5  ;;  %v2832_v15 = vpop.eup %2831  ;;  %v1711_v33 = vadd.f32 1.0, %v2830_v11  ;;  %v2056_v5 = vld [vmem:[%s3551_s5] ss:$0 sm:$0xff] }
 0x764   :  { %2835 = vrcp.f32 %v1704_v8 }
 0x765   :  { %2837 = vrcp.f32 %v1711_v33 }
 0x76d   :  { %v2834_v19 = vpop.eup %2833 }
 0x76e   :  { %v2836_v24 = vpop.eup %2835  ;;  %v1716_v28 = vmul.f32 %v2834_v19, %v2832_v15 }
 0x76f   :  { %v1715_v39 = vmul.f32 %v2836_v24, %v3482_v57  ;;  %v2838_v46 = vpop.eup %2837 }
 0x771   :  { %v3522_v43 = vadd.f32 %v1716_v28, %v1715_v39 }
 0x773   :  { %2839 = vtanh.f32 %v3522_v43 }
 0x77d   :  { %v2840_v52 = vpop.eup %2839 }
 0x77e   :  { %v1719_v56 = vmul.f32 %v2840_v52, %v2838_v46 }
 0x780   :  { %1793 = vmatmul.mubr.f32.vlgmr.msra.gmra.mrb[14].mxu0 %v1719_v56  ;;  %1864 = vmatmul.mubr.f32.vlgmr.msra.gmra.mrb[14].mxu1 %v1719_v56 }
 0x781   :  { %2631 = vmatpush3.bf16.msra.mxu0 %v2630_v4  ;;  %2106 = vmatprep.mubr.msk.f32.mxu0 %vm2985_vm1, %v2983_v0 }
 0x782   :  { %2632 = vmatprep.subr.bf16.mxu0 %v2984_v6 }
 0x785   :  { %2634 = vmatpush3.bf16.msra.mxu0 %v2633_v18 }
 0x786   :  { %2635 = vmatprep.subr.bf16.mxu0 %v2984_v6 }
 0x789   :  { %2637 = vmatpush3.bf16.msra.mxu0 %v2636_v9 }
 0x78a   :  { %2638 = vmatprep.subr.bf16.mxu0 %v2984_v6 }
 0x78d   :  { %2640 = vmatpush3.bf16.msra.mxu0 %v2639_v23 }
 0x78e   :  { %2641 = vmatprep.subr.bf16.mxu0 %v2984_v6 }
 0x791   :  { %2643 = vmatpush3.bf16.msra.mxu0 %v2642_v30 }
 0x792   :  { %2644 = vmatprep.subr.bf16.mxu0 %v2984_v6 }
 0x795   :  { %2646 = vmatpush3.bf16.msra.mxu0 %v2645_v36 }
 0x796   :  { %2647 = vmatprep.subr.bf16.mxu0 %v2984_v6 }
 0x799   :  { %2649 = vmatpush3.bf16.msra.mxu0 %v2648_v40 }
 0x79a   :  { %2650 = vmatprep.subr.bf16.mxu0 %v2984_v6 }
 0x79d   :  { %2652 = vmatpush3.bf16.msra.mxu0 %v2651_v48 }
 0x853   :  { %v1794_v49 = vpop.f32.mrb[14].mxu0  ;;  %v1865_v51 = vpop.f32.mrb[14].mxu1 }
 0x854   :  { %v2667_v53 = vadd.f32 %v1794_v49, %v3260_v14  ;;  %v1796_v55 = vpop.f32.mrb[15].mxu0  ;;  %v1867_v57 = vpop.f32.mrb[15].mxu1  ;;  %v2683_v25 = vadd.f32 %v1865_v51, %v3269_v44 }
 0x855   :  { %v2668_v59 = vadd.f32 %v1796_v55, %v3262_v16  ;;  %v2684_v0 = vadd.f32 %v1867_v57, %v3266_v37 }
 0x856   :  { %v2053_v62 = vmul.f32 -1.442695, %v2667_v53 }
 0x857   :  { %v2054_v12 = vmul.f32 -1.442695, %v2668_v59  ;;  %v2055_v22 = vmul.f32 -1.442695, %v2684_v0 }
 0x858   :  { %2841 = vpow2.f32 %v2053_v62 }
 0x859   :  { %2843 = vpow2.f32 %v2054_v12 }
 0x85a   :  { %2845 = vpow2.f32 %v2055_v22 }
 0x85b   :  { %2847 = vtanh.f32 %v2683_v25 }
 0x862   :  { %v2842_v29 = vpop.eup %2841 }
 0x863   :  { %v2844_v34 = vpop.eup %2843  ;;  %v1877_v35 = vadd.f32 1.0, %v2842_v29 }
 0x864   :  { %v1883_v38 = vadd.f32 1.0, %v2844_v34  ;;  %v2846_v14 = vpop.eup %2845 }
 0x865   :  { %2849 = vrcp.f32 %v1877_v35  ;;  %v2848_v42 = vpop.eup %2847  ;;  %v1890_v54 = vadd.f32 1.0, %v2846_v14 }
 0x866   :  { %2851 = vrcp.f32 %v1883_v38 }
 0x867   :  { %2853 = vrcp.f32 %v1890_v54 }
 0x86f   :  { %v2850_v16 = vpop.eup %2849 }
 0x870   :  { %v2852_v47 = vpop.eup %2851  ;;  %v1895_v50 = vmul.f32 %v2850_v16, %v2848_v42 }
 0x871   :  { %v1894_v58 = vmul.f32 %v2852_v47, %v3522_v43  ;;  %v2854_v44 = vpop.eup %2853 }
 0x873   :  { %v1896_v37 = vadd.f32 %v1895_v50, %v1894_v58 }
 0x875   :  { %2855 = vtanh.f32 %v1896_v37 }
 0x87f   :  { %v2856_v61 = vpop.eup %2855 }
 0x880   :  { %v1898_v2 = vmul.f32 %v2856_v61, %v2854_v44 }
 0x882   :  { %2107 = vmatmul.mubr.f32.vlgmr.msra.gmra.mrb[16].mxu0 %v1898_v2 }
 0x955   :  { %v1994_v8 = vpop.f32.mrb[16].mxu0 }
 0x956   :  { %v1995_v11 = vadd.f32 %v2056_v5, %v1994_v8  ;;  %v2108_v15 = vpop.f32.mrb[17].mxu0 }
 0x958   :  { %1998 = vst [vmem:[#allocation13] sm:$0xff] %v1995_v11 }
 0x959   :  { %2956 = shalt.err (!%p2953_p8)
}
 0x95a   :  { %s2957_s28 = scalar_lea.hbm %s3552_s6, 128 }
 0x95b   :  { %p2958_p9 = scmp.ne.s32.totalorder %s3552_s6, %s2957_s28  ;;  %p2961_p10 = scmp.lt.u32.totalorder %s2957_s28, %s3552_s6 }
 0x95d   :  { %p2963_p11 = pnand %p2961_p10, %p2958_p9 }
 0x95f   :  { %2966 = shalt.err (!%p2963_p11)
}
 0x960   :  { %2008 = dma.vmem_to_hbm [thread:$0]  %s2006_s24, 128, %s3552_s6, [#allocation7]  }
 0x961   :  { %2973 = dma.done.wait [#allocation7], 128  }
 0x962   :  { %2974 = vsyncadd [#allocation7], 4294967168 }
 0x963   :  { %2012 = vsyncpa [#allocation6], 1 }
 0x964   :  { %2013 = vsyncpa [#allocation9], 1 }
 0x965   :  { %2014 = vsyncpa [#allocation12], 1 }
 0x966   :  { %2015 = vsyncpa [#allocation7], 1 }

</bundles_post_ra>
